<compile_context>
chip_gen: v7x
topology: tpu7x:2x2x1
jax: 0.10.0
libtpu: 0.0.40
codegen_flags: <defaults>
</compile_context>

<pallas_src>
import math

import jax
import jax.numpy as jnp
from jax.experimental import pallas as pl
from jax.experimental.pallas import tpu as pltpu


# ----------------------------------------------------------------------------- kernel
def gru_gate_kernel(x_ref, y_ref, wy_ref, ux_ref, ug_ref, bg_ref, o_ref):
    tm, Dp = x_ref.shape
    w_dtype = wy_ref.dtype
    wy = wy_ref[...]                       # (Dp, 3Dp)  [Wr^T | Wz^T | Wg^T]
    ux = ux_ref[...]                       # (Dp, 2Dp)  [Ur^T | Uz^T]
    ug = ug_ref[...]                       # (Dp, Dp)
    bg = bg_ref[...].astype(jnp.float32)   # (1, Dp)

    # For small D the MXU idles behind the sigmoid -> r*x -> Ug dot chain; splitting
    # the row tile lets the scheduler overlap sub-chunk c+1's wide dots with
    # sub-chunk c's gate math.  Gate on static shapes only.
    n_sub = 2 if (Dp <= 256 and tm % 32 == 0) else 1
    rows = tm // n_sub

    for c in range(n_sub):                 # static, unrolled at trace time
        sl = pl.ds(c * rows, rows)
        x = x_ref[sl, :]
        y = y_ref[sl, :]
        x_f = x.astype(jnp.float32)

        # Fused MXU matmuls in the weight dtype (bf16 fast path), f32 accumulation.
        yw = jnp.dot(y.astype(w_dtype), wy, preferred_element_type=jnp.float32)  # (rows, 3Dp)
        xu = jnp.dot(x.astype(w_dtype), ux, preferred_element_type=jnp.float32)  # (rows, 2Dp)

        r = jax.nn.sigmoid(yw[:, :Dp] + xu[:, :Dp])
        z = jax.nn.sigmoid(yw[:, Dp:2 * Dp] + xu[:, Dp:] - bg)
        rx = (r * x_f).astype(w_dtype)     # feed the MXU in the weight dtype
        h = jnp.tanh(yw[:, 2 * Dp:] +
                     jnp.dot(rx, ug, preferred_element_type=jnp.float32))
        g = (1.0 - z) * x_f + z * h
        o_ref[sl, :] = g.astype(o_ref.dtype)


# ----------------------------------------------------------------------------- helpers
def _round_up(n, m):
    return (n + m - 1) // m * m


def _sublane(dtype):
    # 8 rows/sublane-tile for f32, 16 for bf16, 32 for int8/fp8.
    return max(8, 32 // jnp.dtype(dtype).itemsize)


def _vmem_budget_bytes():
    """~85% of the physical per-core VMEM (v5e/v6e: 128 MiB, v7x: 64 MiB)."""
    cap = None
    try:
        info = pltpu.get_tpu_info()
        cap = int(getattr(info, "vmem_capacity_bytes", 0)) or None
    except Exception:
        cap = None
    if cap is None:
        cap = 64 * 1024 * 1024             # conservative fallback (safe on all gens)
    return max(int(cap * 0.85), 32 * 1024 * 1024)


def _per_row_vmem_bytes(Dp, act_itemsize, out_itemsize):
    # double-buffered x & y tiles + double-buffered out tile
    # + ~12*Dp f32 live intermediates (yw 3Dp, xu 2Dp, r, z, h, g, x_f, rx, slack).
    return 2 * 2 * Dp * act_itemsize + 2 * Dp * out_itemsize + 12 * Dp * 4


def _choose_row_tiling(M, Dp, sublane, tm_max, budget, act_itemsize, out_itemsize, w_bytes):
    fixed = w_bytes + (2 << 20)            # resident weights (single-buffered) + slack
    per_row = _per_row_vmem_bytes(Dp, act_itemsize, out_itemsize)
    tm_fit = (budget - fixed) // per_row
    if tm_fit < sublane:
        # TODO(synk): add a K-/N-tiled fallback (extra "arbitrary" contraction grid
        # axis + f32 VMEM accumulator) for D too large for VMEM-resident weights.
        raise ValueError(
            f"packed GRU-gate weights ({w_bytes / 2**20:.1f} MiB) leave no room for a "
            f"row tile within the VMEM budget ({budget / 2**20:.1f} MiB); reduce D or "
            "use bf16 weights.")
    tm_cap = min(int(tm_max), int(tm_fit), _round_up(M, sublane))
    tm_cap = max(sublane, (tm_cap // sublane) * sublane)
    n_tiles = -(-M // tm_cap)
    if n_tiles == 1 and M >= 2 * sublane:
        n_tiles = 2                        # give both v7x TensorCores work
    tm_eff = _round_up(-(-M // n_tiles), sublane)
    return tm_eff, tm_eff * n_tiles


# ----------------------------------------------------------------------------- wrapper
def gru_gating_unit(x, y, params, *, tm_max=1024):
    """x, y: (..., D).  params: output of pack_params (packed/padded weights)."""
    assert x.shape == y.shape, "x and y must have the same shape"
    D = params["D"]
    wy, ux, ug, bg = params["WyT"], params["UxT"], params["UgT"], params["bg"]
    Dp = wy.shape[0]
    assert x.shape[-1] == D, f"last dim of x ({x.shape[-1]}) != packed D ({D})"

    orig_shape = x.shape
    x2 = x.reshape(-1, D)
    y2 = y.reshape(-1, D)
    M = x2.shape[0]
    if Dp != D:                            # pad features once; padded cols are inert
        x2 = jnp.pad(x2, ((0, 0), (0, Dp - D)))
        y2 = jnp.pad(y2, ((0, 0), (0, Dp - D)))

    act_itemsize = jnp.dtype(x.dtype).itemsize
    out_itemsize = act_itemsize
    w_itemsize = jnp.dtype(wy.dtype).itemsize
    sublane = _sublane(x.dtype)

    w_bytes = (wy.size + ux.size + ug.size + bg.size) * w_itemsize
    budget = _vmem_budget_bytes()
    tm_eff, M_pad = _choose_row_tiling(M, Dp, sublane, tm_max, budget,
                                       act_itemsize, out_itemsize, w_bytes)
    if M_pad != M:
        x2 = jnp.pad(x2, ((0, M_pad - M), (0, 0)))
        y2 = jnp.pad(y2, ((0, M_pad - M), (0, 0)))

    cost = pl.CostEstimate(
        flops=int(12 * M_pad * Dp * Dp),                       # 6 matmuls * 2 flops/MAC
        transcendentals=int(3 * M_pad * Dp),                   # 2 sigmoid + 1 tanh
        bytes_accessed=int(3 * M_pad * Dp * act_itemsize + w_bytes))

    def run(single_buffer_weights):
        w_kw = ({"pipeline_mode": pl.Buffered(1)} if single_buffer_weights else {})
        row_spec = pl.BlockSpec((tm_eff, Dp), lambda i: (i, 0))
        # Constant index_map (+ single buffer) -> weights DMA'd once, VMEM-resident.
        wy_spec = pl.BlockSpec((Dp, 3 * Dp), lambda i: (0, 0), **w_kw)
        ux_spec = pl.BlockSpec((Dp, 2 * Dp), lambda i: (0, 0), **w_kw)
        ug_spec = pl.BlockSpec((Dp, Dp), lambda i: (0, 0), **w_kw)
        bg_spec = pl.BlockSpec((1, Dp), lambda i: (0, 0), **w_kw)
        return pl.pallas_call(
            gru_gate_kernel,
            out_shape=jax.ShapeDtypeStruct((M_pad, Dp), x.dtype),
            grid_spec=pltpu.PrefetchScalarGridSpec(
                num_scalar_prefetch=0,
                grid=(M_pad // tm_eff,),
                in_specs=[row_spec, row_spec, wy_spec, ux_spec, ug_spec, bg_spec],
                out_specs=row_spec),
            compiler_params=pltpu.CompilerParams(
                dimension_semantics=("parallel",),    # megacore sharding on v7x
                vmem_limit_bytes=int(budget)),
            cost_estimate=cost,
        )(x2, y2, wy, ux, ug, bg)

    try:
        out = run(True)
    except Exception:
        # Fallback for jax versions where pipeline_mode / Buffered(1) is unavailable:
        # weights are then double-buffered (correct, just more VMEM).
        out = run(False)

    out = out[:M, :D]
    return out.reshape(orig_shape)


# ----------------------------------------------------------------------------- params
def pack_params(raw, *, dtype=jnp.bfloat16):
    """Pack torch-layout (out,in) weights into transposed, fused, 128-padded matrices.
    bf16 weights are the recommended default: the kernel is MXU-bound and casts
    activations to the weight dtype while keeping f32 accumulation + gate math."""
    D = raw["Wr"].shape[0]
    Dp = _round_up(D, 128)
    pad = Dp - D

    def prep(w):  # (D,D) torch (out,in) -> (Dp,Dp) transposed so act @ prep(W) == act @ W^T
        wt = jnp.asarray(w, jnp.float32).T
        return jnp.pad(wt, ((0, pad), (0, pad)))

    return {
        "WyT": jnp.concatenate([prep(raw["Wr"]), prep(raw["Wz"]), prep(raw["Wg"])],
                               axis=1).astype(dtype),              # (Dp, 3Dp)
        "UxT": jnp.concatenate([prep(raw["Ur"]), prep(raw["Uz"])],
                               axis=1).astype(dtype),              # (Dp, 2Dp)
        "UgT": prep(raw["Ug"]).astype(dtype),                      # (Dp, Dp)
        "bg": jnp.pad(jnp.asarray(raw["bg"], jnp.float32).reshape(1, D),
                      ((0, 0), (0, pad))).astype(dtype),           # (1, Dp)
        "D": D,
    }


def init_raw_weights(key, D, bg_val=2.0):
    """Deterministic init mimicking torch.nn.Linear default (uniform +-1/sqrt(D))."""
    bound = 1.0 / math.sqrt(D)
    names = ["Wr", "Ur", "Wz", "Uz", "Wg", "Ug"]
    keys = jax.random.split(key, len(names))
    raw = {n: jax.random.uniform(k, (D, D), jnp.float32, -bound, bound)
           for n, k in zip(names, keys)}
    raw["bg"] = jnp.full((D,), bg_val, jnp.float32)
    return raw


def gru_gating_ref(x, y, raw):
    """Pure-JAX f32 reference mirroring the torch module exactly."""
    xf = x.astype(jnp.float32)
    yf = y.astype(jnp.float32)
    r = jax.nn.sigmoid(yf @ raw["Wr"].T + xf @ raw["Ur"].T)
    z = jax.nn.sigmoid(yf @ raw["Wz"].T + xf @ raw["Uz"].T - raw["bg"])
    h = jnp.tanh(yf @ raw["Wg"].T + (r * xf) @ raw["Ug"].T)
    return (1.0 - z) * xf + z * h


# ----------------------------------------------------------------------------- demo
if __name__ == "__main__":
    B, S, D = 2, 8, 32
    key = jax.random.PRNGKey(0)
    kx, ky, kw = jax.random.split(key, 3)

    x = jax.random.normal(kx, (B, S, D), dtype=jnp.float32)
    y = jax.random.normal(ky, (B, S, D), dtype=jnp.float32)
    raw = init_raw_weights(kw, D, bg_val=2.0)
    ref = gru_gating_ref(x, y, raw)

    # 1) strict f32 path (f32 weights, f32 activations)
    p32 = pack_params(raw, dtype=jnp.float32)
    out32 = jax.block_until_ready(gru_gating_unit(x, y, p32))
    assert out32.shape == x.shape and out32.dtype == x.dtype
    assert jnp.allclose(out32, ref, atol=1e-4, rtol=1e-4), "f32 mismatch vs reference"

    # 2) recommended fast path: bf16 packed weights, f32 activations
    #    (activations are cast to bf16 for the MXU inside the kernel; gate math f32)
    p16 = pack_params(raw, dtype=jnp.bfloat16)
    out_mixed = jax.block_until_ready(gru_gating_unit(x, y, p16))
    assert out_mixed.shape == x.shape and out_mixed.dtype == x.dtype
    assert jnp.allclose(out_mixed, ref, atol=5e-2, rtol=5e-2), "bf16-weight mismatch"

    # 3) full bf16 path (bf16 activations + bf16 weights)
    out16 = jax.block_until_ready(
        gru_gating_unit(x.astype(jnp.bfloat16), y.astype(jnp.bfloat16), p16))
    assert out16.shape == x.shape and out16.dtype == jnp.bfloat16
    assert jnp.allclose(out16.astype(jnp.float32), ref, atol=1e-1, rtol=1e-1), \
        "bf16 mismatch vs reference"

    print("KERNEL_OK")
</pallas_src>

<mosaic_0001>
module attributes {stable_mosaic.version = 11 : i64} {
  func.func @gru_gate_kernel(%arg0: i32, %arg1: memref<8x128xf32, #tpu.memory_space<vmem>>, %arg2: memref<8x128xf32, #tpu.memory_space<vmem>>, %arg3: memref<128x384xf32, #tpu.memory_space<vmem>>, %arg4: memref<128x256xf32, #tpu.memory_space<vmem>>, %arg5: memref<128x128xf32, #tpu.memory_space<vmem>>, %arg6: memref<1x128xf32, #tpu.memory_space<vmem>>, %arg7: memref<8x128xf32, #tpu.memory_space<vmem>>) attributes {dimension_semantics = [#tpu.dimension_semantics<parallel>], iteration_bounds = array<i64: 2>, scalar_prefetch = 0 : i64, scratch_operands = 0 : i64, tpu.core_type = #tpu.core_type<tc>, window_params = [{transform_indices = @transform_0, window_bounds = array<i64: 8, 128>}, {transform_indices = @transform_1, window_bounds = array<i64: 8, 128>}, {pipeline_mode = #tpu.pipeline_mode<synchronous>, transform_indices = @transform_2, window_bounds = array<i64: 128, 384>}, {pipeline_mode = #tpu.pipeline_mode<synchronous>, transform_indices = @transform_3, window_bounds = array<i64: 128, 256>}, {pipeline_mode = #tpu.pipeline_mode<synchronous>, transform_indices = @transform_4, window_bounds = array<i64: 128, 128>}, {pipeline_mode = #tpu.pipeline_mode<synchronous>, transform_indices = @transform_5, window_bounds = array<i64: 1, 128>}, {transform_indices = @transform_6, window_bounds = array<i64: 8, 128>}]} {
    %c0 = arith.constant 0 : index
    %c0_0 = arith.constant 0 : index
    %0 = vector.load %arg3[%c0, %c0_0] : memref<128x384xf32, #tpu.memory_space<vmem>>, vector<128x384xf32>
    %c0_1 = arith.constant 0 : index
    %c0_2 = arith.constant 0 : index
    %1 = vector.load %arg4[%c0_1, %c0_2] : memref<128x256xf32, #tpu.memory_space<vmem>>, vector<128x256xf32>
    %c0_3 = arith.constant 0 : index
    %c0_4 = arith.constant 0 : index
    %2 = vector.load %arg5[%c0_3, %c0_4] : memref<128x128xf32, #tpu.memory_space<vmem>>, vector<128x128xf32>
    %c0_5 = arith.constant 0 : index
    %c0_6 = arith.constant 0 : index
    %3 = vector.load %arg6[%c0_5, %c0_6] : memref<1x128xf32, #tpu.memory_space<vmem>>, vector<1x128xf32>
    %c0_7 = arith.constant 0 : index
    %c0_8 = arith.constant 0 : index
    %4 = vector.load %arg1[%c0_7, %c0_8] : memref<8x128xf32, #tpu.memory_space<vmem>>, vector<8x128xf32>
    %c0_9 = arith.constant 0 : index
    %c0_10 = arith.constant 0 : index
    %5 = vector.load %arg2[%c0_9, %c0_10] : memref<8x128xf32, #tpu.memory_space<vmem>>, vector<8x128xf32>
    %cst = arith.constant dense<0.000000e+00> : vector<8x384xf32>
    %6 = tpu.matmul %5, %0, %cst {dimension_numbers = #tpu.dot_dimension_numbers<[1], [0], [0], [1], [0, 0, 1, 1], [], []>} : vector<8x128xf32>, vector<128x384xf32>, vector<8x384xf32> -> vector<8x384xf32>
    %cst_11 = arith.constant dense<0.000000e+00> : vector<8x256xf32>
    %7 = tpu.matmul %4, %1, %cst_11 {dimension_numbers = #tpu.dot_dimension_numbers<[1], [0], [0], [1], [0, 0, 1, 1], [], []>} : vector<8x128xf32>, vector<128x256xf32>, vector<8x256xf32> -> vector<8x256xf32>
    %8 = vector.extract_strided_slice %6 {offsets = [0, 0], sizes = [8, 128], strides = [1, 1]} : vector<8x384xf32> to vector<8x128xf32>
    %9 = vector.extract_strided_slice %7 {offsets = [0, 0], sizes = [8, 128], strides = [1, 1]} : vector<8x256xf32> to vector<8x128xf32>
    %10 = arith.addf %8, %9 : vector<8x128xf32>
    %11 = arith.negf %10 : vector<8x128xf32>
    %12 = math.exp %11 : vector<8x128xf32>
    %cst_12 = arith.constant 1.000000e+00 : f32
    %13 = vector.broadcast %cst_12 : f32 to vector<8x128xf32>
    %14 = arith.addf %13, %12 : vector<8x128xf32>
    %15 = arith.divf %13, %14 : vector<8x128xf32>
    %16 = vector.extract_strided_slice %6 {offsets = [0, 128], sizes = [8, 128], strides = [1, 1]} : vector<8x384xf32> to vector<8x128xf32>
    %17 = vector.extract_strided_slice %7 {offsets = [0, 128], sizes = [8, 128], strides = [1, 1]} : vector<8x256xf32> to vector<8x128xf32>
    %18 = arith.addf %16, %17 : vector<8x128xf32>
    %19 = vector.broadcast %3 : vector<1x128xf32> to vector<8x128xf32>
    %20 = arith.subf %18, %19 : vector<8x128xf32>
    %21 = arith.negf %20 : vector<8x128xf32>
    %22 = math.exp %21 : vector<8x128xf32>
    %cst_13 = arith.constant 1.000000e+00 : f32
    %23 = vector.broadcast %cst_13 : f32 to vector<8x128xf32>
    %24 = arith.addf %23, %22 : vector<8x128xf32>
    %25 = arith.divf %23, %24 : vector<8x128xf32>
    %26 = arith.mulf %15, %4 : vector<8x128xf32>
    %27 = vector.extract_strided_slice %6 {offsets = [0, 256], sizes = [8, 128], strides = [1, 1]} : vector<8x384xf32> to vector<8x128xf32>
    %cst_14 = arith.constant dense<0.000000e+00> : vector<8x128xf32>
    %28 = tpu.matmul %26, %2, %cst_14 {dimension_numbers = #tpu.dot_dimension_numbers<[1], [0], [0], [1], [0, 0, 1, 1], [], []>} : vector<8x128xf32>, vector<128x128xf32>, vector<8x128xf32> -> vector<8x128xf32>
    %29 = arith.addf %27, %28 : vector<8x128xf32>
    %30 = math.tanh %29 : vector<8x128xf32>
    %cst_15 = arith.constant 1.000000e+00 : f32
    %31 = vector.broadcast %cst_15 : f32 to vector<8x128xf32>
    %32 = arith.subf %31, %25 : vector<8x128xf32>
    %33 = arith.mulf %32, %4 : vector<8x128xf32>
    %34 = arith.mulf %25, %30 : vector<8x128xf32>
    %35 = arith.addf %33, %34 : vector<8x128xf32>
    %c0_16 = arith.constant 0 : index
    %c0_17 = arith.constant 0 : index
    %36 = vector.load %arg7[%c0_16, %c0_17] : memref<8x128xf32, #tpu.memory_space<vmem>>, vector<8x128xf32>
    tpu.vector_store %arg7[%c0_16, %c0_17], %35 {strides = array<i32>} : memref<8x128xf32, #tpu.memory_space<vmem>>, vector<8x128xf32>,
    return
  }
  func.func @transform_0(%arg0: i32) -> (i32, i32) {
    %c0_i32 = arith.constant 0 : i32
    %c0_i32_0 = arith.constant 0 : i32
    return %arg0, %c0_i32 : i32, i32
  }
  func.func @transform_1(%arg0: i32) -> (i32, i32) {
    %c0_i32 = arith.constant 0 : i32
    %c0_i32_0 = arith.constant 0 : i32
    return %arg0, %c0_i32 : i32, i32
  }
  func.func @transform_2(%arg0: i32) -> (i32, i32) {
    %c0_i32 = arith.constant 0 : i32
    %c0_i32_0 = arith.constant 0 : i32
    %c0_i32_1 = arith.constant 0 : i32
    return %c0_i32, %c0_i32_0 : i32, i32
  }
  func.func @transform_3(%arg0: i32) -> (i32, i32) {
    %c0_i32 = arith.constant 0 : i32
    %c0_i32_0 = arith.constant 0 : i32
    %c0_i32_1 = arith.constant 0 : i32
    return %c0_i32, %c0_i32_0 : i32, i32
  }
  func.func @transform_4(%arg0: i32) -> (i32, i32) {
    %c0_i32 = arith.constant 0 : i32
    %c0_i32_0 = arith.constant 0 : i32
    %c0_i32_1 = arith.constant 0 : i32
    return %c0_i32, %c0_i32_0 : i32, i32
  }
  func.func @transform_5(%arg0: i32) -> (i32, i32) {
    %c0_i32 = arith.constant 0 : i32
    %c0_i32_0 = arith.constant 0 : i32
    %c0_i32_1 = arith.constant 0 : i32
    return %c0_i32, %c0_i32_0 : i32, i32
  }
  func.func @transform_6(%arg0: i32) -> (i32, i32) {
    %c0_i32 = arith.constant 0 : i32
    %c0_i32_0 = arith.constant 0 : i32
    return %arg0, %c0_i32 : i32, i32
  }
}

module attributes {stable_mosaic.version = 11 : i64} {
  func.func @gru_gate_kernel(%arg0: i32, %arg1: memref<8x128xf32, #tpu.memory_space<vmem>>, %arg2: memref<8x128xf32, #tpu.memory_space<vmem>>, %arg3: memref<128x384xf32, #tpu.memory_space<vmem>>, %arg4: memref<128x256xf32, #tpu.memory_space<vmem>>, %arg5: memref<128x128xf32, #tpu.memory_space<vmem>>, %arg6: memref<1x128xf32, #tpu.memory_space<vmem>>, %arg7: memref<8x128xf32, #tpu.memory_space<vmem>>) attributes {dimension_semantics = [#tpu.dimension_semantics<parallel>], iteration_bounds = array<i64: 2>, scalar_prefetch = 0 : i64, scratch_operands = 0 : i64, tpu.core_type = #tpu.core_type<tc>, window_params = [{transform_indices = @transform_0, window_bounds = array<i64: 8, 128>}, {transform_indices = @transform_1, window_bounds = array<i64: 8, 128>}, {pipeline_mode = #tpu.pipeline_mode<synchronous>, transform_indices = @transform_2, window_bounds = array<i64: 128, 384>}, {pipeline_mode = #tpu.pipeline_mode<synchronous>, transform_indices = @transform_3, window_bounds = array<i64: 128, 256>}, {pipeline_mode = #tpu.pipeline_mode<synchronous>, transform_indices = @transform_4, window_bounds = array<i64: 128, 128>}, {pipeline_mode = #tpu.pipeline_mode<synchronous>, transform_indices = @transform_5, window_bounds = array<i64: 1, 128>}, {transform_indices = @transform_6, window_bounds = array<i64: 8, 128>}]} {
    %c0 = arith.constant 0 : index
    %c0_0 = arith.constant 0 : index
    %0 = vector.load %arg3[%c0, %c0_0] : memref<128x384xf32, #tpu.memory_space<vmem>>, vector<128x384xf32>
    %c0_1 = arith.constant 0 : index
    %c0_2 = arith.constant 0 : index
    %1 = vector.load %arg4[%c0_1, %c0_2] : memref<128x256xf32, #tpu.memory_space<vmem>>, vector<128x256xf32>
    %c0_3 = arith.constant 0 : index
    %c0_4 = arith.constant 0 : index
    %2 = vector.load %arg5[%c0_3, %c0_4] : memref<128x128xf32, #tpu.memory_space<vmem>>, vector<128x128xf32>
    %c0_5 = arith.constant 0 : index
    %c0_6 = arith.constant 0 : index
    %3 = vector.load %arg6[%c0_5, %c0_6] : memref<1x128xf32, #tpu.memory_space<vmem>>, vector<1x128xf32>
    %c0_7 = arith.constant 0 : index
    %c0_8 = arith.constant 0 : index
    %4 = vector.load %arg1[%c0_7, %c0_8] : memref<8x128xf32, #tpu.memory_space<vmem>>, vector<8x128xf32>
    %c0_9 = arith.constant 0 : index
    %c0_10 = arith.constant 0 : index
    %5 = vector.load %arg2[%c0_9, %c0_10] : memref<8x128xf32, #tpu.memory_space<vmem>>, vector<8x128xf32>
    %cst = arith.constant dense<0.000000e+00> : vector<8x384xf32>
    %6 = tpu.matmul %5, %0, %cst {dimension_numbers = #tpu.dot_dimension_numbers<[1], [0], [0], [1], [0, 0, 1, 1], [], []>} : vector<8x128xf32>, vector<128x384xf32>, vector<8x384xf32> -> vector<8x384xf32>
    %cst_11 = arith.constant dense<0.000000e+00> : vector<8x256xf32>
    %7 = tpu.matmul %4, %1, %cst_11 {dimension_numbers = #tpu.dot_dimension_numbers<[1], [0], [0], [1], [0, 0, 1, 1], [], []>} : vector<8x128xf32>, vector<128x256xf32>, vector<8x256xf32> -> vector<8x256xf32>
    %8 = vector.extract_strided_slice %6 {offsets = [0, 0], sizes = [8, 128], strides = [1, 1]} : vector<8x384xf32> to vector<8x128xf32>
    %9 = vector.extract_strided_slice %7 {offsets = [0, 0], sizes = [8, 128], strides = [1, 1]} : vector<8x256xf32> to vector<8x128xf32>
    %10 = arith.addf %8, %9 : vector<8x128xf32>
    %11 = arith.negf %10 : vector<8x128xf32>
    %12 = math.exp %11 : vector<8x128xf32>
    %cst_12 = arith.constant 1.000000e+00 : f32
    %13 = vector.broadcast %cst_12 : f32 to vector<8x128xf32>
    %14 = arith.addf %13, %12 : vector<8x128xf32>
    %15 = arith.divf %13, %14 : vector<8x128xf32>
    %16 = vector.extract_strided_slice %6 {offsets = [0, 128], sizes = [8, 128], strides = [1, 1]} : vector<8x384xf32> to vector<8x128xf32>
    %17 = vector.extract_strided_slice %7 {offsets = [0, 128], sizes = [8, 128], strides = [1, 1]} : vector<8x256xf32> to vector<8x128xf32>
    %18 = arith.addf %16, %17 : vector<8x128xf32>
    %19 = vector.broadcast %3 : vector<1x128xf32> to vector<8x128xf32>
    %20 = arith.subf %18, %19 : vector<8x128xf32>
    %21 = arith.negf %20 : vector<8x128xf32>
    %22 = math.exp %21 : vector<8x128xf32>
    %cst_13 = arith.constant 1.000000e+00 : f32
    %23 = vector.broadcast %cst_13 : f32 to vector<8x128xf32>
    %24 = arith.addf %23, %22 : vector<8x128xf32>
    %25 = arith.divf %23, %24 : vector<8x128xf32>
    %26 = arith.mulf %15, %4 : vector<8x128xf32>
    %27 = vector.extract_strided_slice %6 {offsets = [0, 256], sizes = [8, 128], strides = [1, 1]} : vector<8x384xf32> to vector<8x128xf32>
    %cst_14 = arith.constant dense<0.000000e+00> : vector<8x128xf32>
    %28 = tpu.matmul %26, %2, %cst_14 {dimension_numbers = #tpu.dot_dimension_numbers<[1], [0], [0], [1], [0, 0, 1, 1], [], []>} : vector<8x128xf32>, vector<128x128xf32>, vector<8x128xf32> -> vector<8x128xf32>
    %29 = arith.addf %27, %28 : vector<8x128xf32>
    %30 = math.tanh %29 : vector<8x128xf32>
    %cst_15 = arith.constant 1.000000e+00 : f32
    %31 = vector.broadcast %cst_15 : f32 to vector<8x128xf32>
    %32 = arith.subf %31, %25 : vector<8x128xf32>
    %33 = arith.mulf %32, %4 : vector<8x128xf32>
    %34 = arith.mulf %25, %30 : vector<8x128xf32>
    %35 = arith.addf %33, %34 : vector<8x128xf32>
    %c0_16 = arith.constant 0 : index
    %c0_17 = arith.constant 0 : index
    %36 = vector.load %arg7[%c0_16, %c0_17] : memref<8x128xf32, #tpu.memory_space<vmem>>, vector<8x128xf32>
    tpu.vector_store %arg7[%c0_16, %c0_17], %35 {strides = array<i32>} : memref<8x128xf32, #tpu.memory_space<vmem>>, vector<8x128xf32>,
    return
  }
  func.func @transform_0(%arg0: i32) -> (i32, i32) {
    %c0_i32 = arith.constant 0 : i32
    %c0_i32_0 = arith.constant 0 : i32
    return %arg0, %c0_i32 : i32, i32
  }
  func.func @transform_1(%arg0: i32) -> (i32, i32) {
    %c0_i32 = arith.constant 0 : i32
    %c0_i32_0 = arith.constant 0 : i32
    return %arg0, %c0_i32 : i32, i32
  }
  func.func @transform_2(%arg0: i32) -> (i32, i32) {
    %c0_i32 = arith.constant 0 : i32
    %c0_i32_0 = arith.constant 0 : i32
    %c0_i32_1 = arith.constant 0 : i32
    return %c0_i32, %c0_i32_0 : i32, i32
  }
  func.func @transform_3(%arg0: i32) -> (i32, i32) {
    %c0_i32 = arith.constant 0 : i32
    %c0_i32_0 = arith.constant 0 : i32
    %c0_i32_1 = arith.constant 0 : i32
    return %c0_i32, %c0_i32_0 : i32, i32
  }
  func.func @transform_4(%arg0: i32) -> (i32, i32) {
    %c0_i32 = arith.constant 0 : i32
    %c0_i32_0 = arith.constant 0 : i32
    %c0_i32_1 = arith.constant 0 : i32
    return %c0_i32, %c0_i32_0 : i32, i32
  }
  func.func @transform_5(%arg0: i32) -> (i32, i32) {
    %c0_i32 = arith.constant 0 : i32
    %c0_i32_0 = arith.constant 0 : i32
    %c0_i32_1 = arith.constant 0 : i32
    return %c0_i32, %c0_i32_0 : i32, i32
  }
  func.func @transform_6(%arg0: i32) -> (i32, i32) {
    %c0_i32 = arith.constant 0 : i32
    %c0_i32_0 = arith.constant 0 : i32
    return %arg0, %c0_i32 : i32, i32
  }
}

</mosaic_0001>

<bundles_post_ra>
// kernel: tpu_custom_call.1
= control target key start
LH: loop header
LB: loop body
LE: loop exit
PB: predicated region body
PF: predicated region fallthrough
CT: control target
= control target key end

     0   :  { %s1839_s0 = inlined_call_operand.hbm [shape: f32[16,128], index: 0, kind: input, shape index: {}]   ;;  %s1840_s1 = inlined_call_operand.hbm [shape: f32[16,128], index: 1, kind: input, shape index: {}]   ;;  %s1841_s2 = inlined_call_operand.hbm [shape: f32[128,384], index: 2, kind: input, shape index: {}]   ;;  %s1842_s3 = inlined_call_operand.hbm [shape: f32[128,256], index: 3, kind: input, shape index: {}]   ;;  %s1843_s4 = inlined_call_operand.hbm [shape: f32[128,128], index: 4, kind: input, shape index: {}]   ;;  %s1844_s5 = inlined_call_operand.vmem [shape: f32[1,128], index: 5, kind: input, shape index: {}]   ;;  %s1845_s6 = inlined_call_operand.hbm [shape: f32[16,128], index: 6, kind: output, shape index: {}]  }
   0x1   :  { %1850 = sst [smem:[#allocation17_spill]] %s1841_s2 }
   0x2   :  { %1851 = sst [smem:[#allocation18_spill]] %s1842_s3 }
   0x3   :  { %1852 = sst [smem:[#allocation19_spill]] %s1843_s4 }
   0x4   :  { %11 = vsyncpa [#allocation3], 0 }
   0x5   :  { %13 = vsyncpa [#allocation3 + $0x1], 0 }
   0x6   :  { %14 = vsyncpa [#allocation6], 0 }
   0x7   :  { %16 = vsyncpa [#allocation6 + $0x1], 0 }
   0x8   :  { %17 = vsyncpa [#allocation9], 0 }
   0x9   :  { %18 = vsyncpa [#allocation4], 0 }
   0xa   :  { %20 = vsyncpa [#allocation4 + $0x1], 0  ;;  %s1511_s21 = smov 0   ;;  %s1513_s22 = smov 0  }
   0xb   :  { %s1515_s23 = smov 0   ;;  %s1517_s24 = smov 0  }
   0xc LB: > { %s1532_s25 = sadd.s32 4294967295, %s1459_s24   ;;  %s892_s26 = sadd.s32 4294967294, %s1459_s24   ;;  %s1459_s24 = sphi %s1517_s24, %s1876_s24   ;;  %s1455_s23 = sphi %s1515_s23, %s1875_s23   ;;  %s1451_s22 = sphi %s1513_s22, %s1874_s22   ;;  %s1447_s21 = sphi %s1511_s21, %s1873_s21  }
   0xd   : > { %p46_p0 = scmp.ne.s32.totalorder %s1451_s22, %s1447_s21  ;;  %p1846_p1 = scmp.eq.s32.totalorder %s1532_s25, 0 }
   0xe   : > { %p186_p3 = scmp.eq.s32.totalorder %s892_s26, 1  ;;  %p893_p5 = scmp.ge.s32.totalorder %s1459_s24, 1 }
   0xf   : > { %p1541_p4 = por %p1846_p1, %p46_p0  ;;  %p193_p7 = scmp.lt.s32.totalorder %s1459_s24, 3 }
  0x10   : > { %p1546_p6 = por %p186_p3, %p46_p0  ;;  %s1461_s30 = smov [#allocation7]  }
  0x11   : > { %s1853_s27 = scalar_select %p1541_p4, 1, 0 }
  0x12   : > { %s1854_s28 = scalar_select %p1546_p6, 1, 0 }
  0x13   : > { %p1551_p8 = pnand %p893_p5, %p193_p7  ;;  %s205_s7 = sshll.u32 %s1461_s30, 4  ;;  %s1555_s7 = int_to_ptr.vmem [resolvable:$true] %s205_s7 }
  0x14   : > { %s1462_s9 = smov [#allocation8]   ;;  %s1857_s2 = sld [smem:[#allocation17_spill]] }
  0x15   : > { %s1855_s29 = scalar_select %p1551_p8, 1, 0 }
  0x16   : > { %p1154_p9 = pneg %p1551_p8  ;;  %s218_s10 = sshll.u32 %s1462_s9, 4  ;;  %s1566_s10 = int_to_ptr.vmem [resolvable:$true] %s218_s10 }
  0x18   : > { %p1562_p11 = pnand %p1154_p9, %p1846_p1 }
  0x1a   : > { %s1237_s13 = scalar_lea.hbm %s1857_s2, 6144  ;;  %p1576_p13 = pneg %p1562_p11 }
  0x1b   : > { %p1238_p12 = scmp.ne.s32.totalorder %s1857_s2, %s1237_s13  ;;  %p1244_p5 = scmp.lt.u32.totalorder %s1237_s13, %s1857_s2 }
  0x1d   : > { %p1240_p0 = pnand %p1576_p13, %p1238_p12 }
  0x1f   : > { %p1241_p3 = pneg %p1240_p0 }
  0x21   : > { %p1246_p7 = pnand %p1244_p5, %p1241_p3 }
  0x23   : > { %1249 = shalt.err (!%p1246_p7)
}
  0x24   : > { %s1250_s19 = scalar_lea.vmem %s1555_s7, 6144  ;;  %p1258_p2 = scmp.lt.s32.totalorder %s1555_s7, %s1555_s7 }
  0x25   : > { %p1251_p9 = scmp.ne.s32.totalorder %s1555_s7, %s1250_s19  ;;  %p1259_p6 = scmp.lt.s32.totalorder %s1250_s19, %s1250_s19 }
  0x27   : > { %p1253_p10 = pnand %p1251_p9, %p1576_p13  ;;  %p1260_p12 = por %p1259_p6, %p1258_p2 }
  0x29   : > { %p1254_p1 = pneg %p1253_p10 }
  0x2b   : > { %p1261_p0 = pnand %p1260_p12, %p1254_p1 }
  0x2d   : > { %1264 = shalt.err (!%p1261_p0)
}
  0x2e   : > { %s1463_s20 = smov 384   ;;  %s1464_s26 = smov 24  }
  0x2f   : > { %1157 = dma.hbm_to_vmem [thread:$0]  (!%p1562_p11), %s1857_s2, 6144, %s1555_s7, [#allocation6], %s1463_s20, %s1463_s20, %s1464_s26  }
  0x30   : > { %s1859_s3 = sld [smem:[#allocation18_spill]] }
  0x36   : > { %s1265_s13 = scalar_lea.hbm %s1859_s3, 4096 }
  0x37   : > { %p1266_p2 = scmp.ne.s32.totalorder %s1859_s3, %s1265_s13  ;;  %p1272_p10 = scmp.lt.u32.totalorder %s1265_s13, %s1859_s3 }
  0x39   : > { %p1268_p1 = pnand %p1266_p2, %p1576_p13 }
  0x3b   : > { %p1269_p6 = pneg %p1268_p1 }
  0x3d   : > { %p1274_p3 = pnand %p1272_p10, %p1269_p6 }
  0x3f   : > { %1277 = shalt.err (!%p1274_p3)
}
  0x40   : > { %s1278_s7 = scalar_lea.vmem %s1566_s10, 4096  ;;  %p1286_p12 = scmp.lt.s32.totalorder %s1566_s10, %s1566_s10 }
  0x41   : > { %p1279_p5 = scmp.ne.s32.totalorder %s1566_s10, %s1278_s7  ;;  %p1287_p0 = scmp.lt.s32.totalorder %s1278_s7, %s1278_s7 }
  0x43   : > { %p1281_p7 = pnand %p1279_p5, %p1576_p13  ;;  %p1288_p2 = por %p1287_p0, %p1286_p12 }
  0x45   : > { %p1282_p9 = pneg %p1281_p7 }
  0x47   : > { %p1289_p1 = pnand %p1288_p2, %p1282_p9 }
  0x49   : > { %1292 = shalt.err (!%p1289_p1)
}
  0x4a   : > { %s1465_s19 = smov 256   ;;  %s1466_s20 = smov 16  }
  0x4b   : > { %1160 = dma.hbm_to_vmem [thread:$0]  (!%p1562_p11), %s1859_s3, 4096, %s1566_s10, [#allocation9], %s1465_s19, %s1465_s19, %s1466_s20  }
  0x4c   : > { %s1467_s9 = smov [#allocation10]   ;;  %s1860_s4 = sld [smem:[#allocation19_spill]] }
  0x4d   : > { %s231_s11 = sshll.u32 %s1467_s9, 4  ;;  %s232_s11 = int_to_ptr.vmem [resolvable:$true] %s231_s11 }
  0x52   : > { %s1293_s14 = scalar_lea.hbm %s1860_s4, 2048 }
  0x53   : > { %p1294_p6 = scmp.ne.s32.totalorder %s1860_s4, %s1293_s14  ;;  %p1300_p5 = scmp.lt.u32.totalorder %s1293_s14, %s1860_s4 }
  0x55   : > { %p1296_p10 = pnand %p1294_p6, %p1576_p13 }
  0x57   : > { %p1297_p3 = pneg %p1296_p10 }
  0x59   : > { %p1302_p7 = pnand %p1300_p5, %p1297_p3 }
  0x5b   : > { %1305 = shalt.err (!%p1302_p7)
}
  0x5c   : > { %s1306_s10 = scalar_lea.vmem %s232_s11, 2048  ;;  %p1314_p2 = scmp.lt.s32.totalorder %s232_s11, %s232_s11 }
  0x5d   : > { %p1307_p9 = scmp.ne.s32.totalorder %s232_s11, %s1306_s10  ;;  %p1315_p1 = scmp.lt.s32.totalorder %s1306_s10, %s1306_s10 }
  0x5f   : > { %p1309_p12 = pnand %p1307_p9, %p1576_p13  ;;  %p1316_p4 = por %p1315_p1, %p1314_p2 }
  0x61   : > { %p1310_p0 = pneg %p1309_p12 }
  0x63   : > { %p1317_p8 = pnand %p1316_p4, %p1310_p0 }
  0x65   : > { %1320 = shalt.err (!%p1317_p8)
}
  0x66   : > { %s1468_s19 = smov 128   ;;  %s1469_s16 = smov 8  }
  0x67   : > { %1163 = dma.hbm_to_vmem [thread:$0]  (!%p1562_p11), %s1860_s4, 2048, %s232_s11, [#allocation9], %s1468_s19, %s1468_s19, %s1469_s16  }
  0x68   : > { %s1639_s30 = sadd.s32 1, %s1459_s24   ;;  %s33_s12 = sadd.s32 1, %s1455_s23 }
  0x69   : > { %s30_s9 = ssub.s32 %s1459_s24, %s1639_s30  ;;  %p40_p8 = scmp.ne.s32.totalorder %s1455_s23, %s1451_s22 }
  0x6a   : > { %p31_p4 = scmp.eq.s32.totalorder %s30_s9, 0  ;;  %p41_p13 = scmp.eq.s32.totalorder %s1459_s24, 0 }
  0x6b   : > { %p1178_p6 = scmp.lt.s32.totalorder %s1459_s24, 2  ;;  %p1861_p3 = scmp.eq.s32.totalorder %s1532_s25, 1 }
  0x6c   : > { %s1649_s13 = scalar_select %p31_p4, %s1455_s23, %s33_s12  }
  0x6d   : > { %p42_p10 = por %p41_p13, %p40_p8  ;;  %p1653_p5 = por %p1861_p3, %p40_p8 }
  0x6e   : > { %s248_s8 = sand.u32 1, %s1455_s23   ;;  %s899_s15 = sshll.u32 %s1459_s24, 7 }
  0x6f   : > { %s1862_s14 = scalar_select %p1653_p5, 1, 0 }
  0x70   : > { %s1659_s11 = sshll.u32 %s248_s8, 3  ;;  %s1664_s7 = scalar_lea.hbm %s1839_s0, %s899_s15 }
  0x71   : > { %s252_s10 = scalar_lea.vmem [#allocation2], %s1659_s11  ;;  %p1667_p11 = pnand %p1178_p6, %p42_p10 }
  0x72   : > { %s259_s19 = sshll.u32 %s252_s10, 4  ;;  %s1676_s9 = scalar_lea.hbm %s1840_s1, %s899_s15  ;;  %s1671_s19 = int_to_ptr.vmem [resolvable:$true] %s259_s19 }
  0x73   : > { %s249_s12 = scalar_lea.sflag [#allocation3], %s248_s8  ;;  %s1321_s17 = scalar_lea.hbm %s1664_s7, 128 }
  0x74   : > { %p1322_p7 = scmp.ne.s32.totalorder %s1664_s7, %s1321_s17  ;;  %p1323_p9 = pneg %p1667_p11 }
  0x75   : > { %s1326_s2 = scalar_lea.hbm %s1839_s0, 256  ;;  %p1327_p2 = scmp.lt.u32.totalorder %s1664_s7, %s1839_s0 }
  0x76   : > { %p1324_p12 = pnand %p1323_p9, %p1322_p7  ;;  %p1328_p1 = scmp.lt.u32.totalorder %s1326_s2, %s1321_s17 }
  0x77   : > { %p1330_p8 = scmp.lt.u32.totalorder %s1321_s17, %s1664_s7 }
  0x78   : > { %p1325_p0 = pneg %p1324_p12  ;;  %p1329_p4 = por %p1328_p1, %p1327_p2 }
  0x7a   : > { %p1331_p13 = por %p1330_p8, %p1329_p4 }
  0x7c   : > { %p1332_p6 = pnand %p1331_p13, %p1325_p0 }
  0x7e   : > { %1335 = shalt.err (!%p1332_p6)
}
  0x7f   : > { %s1336_s8 = scalar_lea.vmem %s1671_s19, 128  ;;  %s1470_s15 = smov [#allocation2]  }
  0x80   : > { %p1337_p10 = scmp.ne.s32.totalorder %s1671_s19, %s1336_s8  ;;  %s1341_s20 = sshll.u32 %s1470_s15, 4  ;;  %s1342_s20 = int_to_ptr.vmem [resolvable:$false] %s1341_s20 }
  0x81   : > { %s1343_s3 = scalar_lea.vmem %s1342_s20, 256  ;;  %p1344_p12 = scmp.lt.s32.totalorder %s1671_s19, %s1342_s20 }
  0x82   : > { %p1339_p3 = pnand %p1337_p10, %p1323_p9  ;;  %p1345_p2 = scmp.lt.s32.totalorder %s1343_s3, %s1336_s8 }
  0x84   : > { %p1340_p7 = pneg %p1339_p3  ;;  %p1346_p1 = por %p1345_p2, %p1344_p12 }
  0x86   : > { %p1347_p4 = pnand %p1346_p1, %p1340_p7 }
  0x88   : > { %1350 = shalt.err (!%p1347_p4)
}
  0x89   : > { %1167 = dma.hbm_to_vmem [thread:$0]  (!%p1667_p11), %s1664_s7, 128, %s1671_s19, %s249_s12  }
  0x8a   : > { %s266_s2 = sand.u32 1, %s1459_s24   ;;  %s270_s4 = scalar_lea.vmem [#allocation5], %s1659_s11 }
  0x8b   : > { %s277_s26 = sshll.u32 %s270_s4, 4  ;;  %s267_s17 = scalar_lea.sflag [#allocation6], %s266_s2  ;;  %s278_s26 = int_to_ptr.vmem [resolvable:$true] %s277_s26 }
  0x8c   : > { %s1351_s18 = scalar_lea.hbm %s1676_s9, 128  ;;  %s1356_s15 = scalar_lea.hbm %s1840_s1, 256 }
  0x8d   : > { %p1352_p0 = scmp.ne.s32.totalorder %s1676_s9, %s1351_s18  ;;  %p1357_p6 = scmp.lt.u32.totalorder %s1676_s9, %s1840_s1 }
  0x8e   : > { %p1358_p10 = scmp.lt.u32.totalorder %s1356_s15, %s1351_s18  ;;  %p1360_p7 = scmp.lt.u32.totalorder %s1351_s18, %s1676_s9 }
  0x8f   : > { %p1354_p8 = pnand %p1352_p0, %p1323_p9 }
  0x90   : > { %p1359_p3 = por %p1358_p10, %p1357_p6 }
  0x91   : > { %p1355_p13 = pneg %p1354_p8 }
  0x92   : > { %p1361_p12 = por %p1360_p7, %p1359_p3 }
  0x94   : > { %p1362_p2 = pnand %p1361_p12, %p1355_p13 }
  0x96   : > { %1365 = shalt.err (!%p1362_p2)
}
  0x97   : > { %s1366_s11 = scalar_lea.vmem %s278_s26, 128  ;;  %s1471_s7 = smov [#allocation5]  }
  0x98   : > { %p1367_p1 = scmp.ne.s32.totalorder %s278_s26, %s1366_s11  ;;  %s1371_s19 = sshll.u32 %s1471_s7, 4  ;;  %s1372_s19 = int_to_ptr.vmem [resolvable:$false] %s1371_s19 }
  0x99   : > { %s1373_s12 = scalar_lea.vmem %s1372_s19, 256  ;;  %p1374_p8 = scmp.lt.s32.totalorder %s278_s26, %s1372_s19 }
  0x9a   : > { %p1369_p4 = pnand %p1367_p1, %p1323_p9  ;;  %p1375_p5 = scmp.lt.s32.totalorder %s1373_s12, %s1366_s11 }
  0x9c   : > { %p1370_p0 = pneg %p1369_p4  ;;  %p1376_p6 = por %p1375_p5, %p1374_p8 }
  0x9e   : > { %p1377_p10 = pnand %p1376_p6, %p1370_p0 }
  0xa0   : > { %1380 = shalt.err (!%p1377_p10)
}
  0xa1   : > { %1170 = dma.hbm_to_vmem [thread:$0]  (!%p1667_p11), %s1676_s9, 128, %s278_s26, %s267_s17  }
  0xa2   : > { %p1864_p13 = scmp.ne.s32.totalorder %s1855_s29, 0 }
  0xa3   : > { %s1727_s2 = sand.u32 (!%p1864_p13), 1, %s1451_s22   ;;  %p1865_p5 = scmp.ne.s32.totalorder (!%p1864_p13), %s1853_s27, 0 }
  0xa4   : > { %286 = sbr.rel (%p1864_p13) target bundleno = 730 (0x2da), region = 44  ;;  %s1730_s4 = sshll.u32 (!%p1864_p13), %s1727_s2, 3 }
  0xa5   : > { %s289_s18 = scalar_lea.sflag (!%p1864_p13), [#allocation3], %s1727_s2  ;;  %s292_s10 = scalar_lea.vmem (!%p1864_p13), [#allocation2], %s1730_s4 }
  0xab   : > { %1426 = dma.done.wait (%p1865_p5), %s289_s18, 128  }
  0xac   : > { %1428 = vsyncadd (%p1865_p5), %s289_s18, 4294967168  ;;  %s297_s29 = sand.u32 1, %s1532_s25   ;;  %s301_s9 = scalar_lea.vmem [#allocation5], %s1730_s4 }
  0xad   : > { %s298_s16 = scalar_lea.sflag [#allocation6], %s297_s29 }
  0xae   : > { %1430 = dma.done.wait (%p1865_p5), %s298_s16, 128  }
  0xaf   : > { %1432 = vsyncadd (%p1865_p5), %s298_s16, 4294967168  ;;  %p1866_p11 = scmp.eq.s32.totalorder %s1532_s25, 0 }
  0xb1   : > { %1434 = dma.done.wait (%p1866_p11), [#allocation6], 6144   ;;  %p1867_p9 = pmov %p1866_p11 }
  0xb3   : > { %1436 = vsyncadd (%p1867_p9), [#allocation6], 4294961152  ;;  %p1868_p3 = pmov %p1867_p9 }
  0xb5   : > { %1438 = dma.done.wait (%p1868_p3), [#allocation9], 6144   ;;  %p1869_p7 = pmov %p1868_p3 }
  0xb6   : > { %v1472_v0 = vmov 0.0   ;;  %v1473_v1 = vmov 0.0|0.0   ;;  %vm1474_vm0 = vmmov 0   ;;  %v348_v2 = vld [vmem:[#allocation7 + $0x8] sm:$0xff]  ;;  %v351_v3 = vld [vmem:[#allocation7 + $0x20] sm:$0xff]  ;;  %v350_v6 = vld [vmem:[#allocation7 + $0x18] sm:$0xff] }
  0xb7   : > { %1440 = vsyncadd (%p1869_p7), [#allocation9], 4294961152  ;;  %510 = vmatprep.mubr.f32.mxu0 %v1472_v0  ;;  %1052 = vmatprep.subr.bf16.mxu1 %v1473_v1  ;;  %v347_v4 = vld [vmem:[#allocation7] sm:$0xff]  ;;  %v1020_v5 = vpack.c.bf16 %v351_v3, %v348_v2  ;;  %v354_v7 = vld [vmem:[#allocation7 + $0x38] sm:$0xff]  ;;  %s913_s17 = sshll.u32 %s1532_s25, 7  ;;  %s346_s8 = scalar_lea.vmem [#allocation11], %s1730_s4 }
  0xb8   : > { %982 = vmatprep.mubr.msk.f32.mxu1 %vm1474_vm0, %v1472_v0  ;;  %v357_v8 = vld [vmem:[#allocation7 + $0x50] sm:$0xff]  ;;  %v1022_v9 = vpack.c.bf16 %v350_v6, %v347_v4  ;;  %v356_v12 = vld [vmem:[#allocation7 + $0x48] sm:$0xff]  ;;  %v363_v14 = vld [vmem:[#allocation7 + $0x80] sm:$0xff]  ;;  %s771_s15 = sshll.u32 %s346_s8, 4  ;;  %s1795_s11 = scalar_lea.hbm %s1845_s6, %s913_s17  ;;  %s1797_s15 = int_to_ptr.vmem [resolvable:$true] %s771_s15 }
  0xb9   : > { %v1024_v10 = vpack.c.bf16 %v357_v8, %v354_v7  ;;  %v353_v11 = vld [vmem:[#allocation7 + $0x30] sm:$0xff]  ;;  %v360_v13 = vld [vmem:[#allocation7 + $0x68] sm:$0xff]  ;;  %1021 = vmatprep.subr.bf16.mxu0 %v1020_v5  ;;  %v359_v17 = vld [vmem:[#allocation7 + $0x60] sm:$0xff]  ;;  %s758_s7 = scalar_lea.sflag [#allocation4], %s1727_s2  ;;  %s1381_s19 = scalar_lea.vmem %s1797_s15, 128 }
  0xba   : > { %1023 = vmatpush1.bf16.msra.mxu0 %v1022_v9  ;;  %v1026_v15 = vpack.c.bf16 %v356_v12, %v353_v11  ;;  %v1028_v16 = vpack.c.bf16 %v363_v14, %v360_v13  ;;  %v362_v18 = vld [vmem:[#allocation7 + $0x78] sm:$0xff]  ;;  %v369_v20 = vld [vmem:[#allocation7 + $0xb0] sm:$0xff]  ;;  %v368_v24 = vld [vmem:[#allocation7 + $0xa8] sm:$0xff]  ;;  %p1382_p12 = scmp.ne.s32.totalorder %s1797_s15, %s1381_s19  ;;  %p1870_p2 = scmp.ne.s32.totalorder %s1862_s14, 0 }
  0xbb   : > { %1025 = vmatprep.subr.bf16.mxu0 %v1024_v10  ;;  %v366_v19 = vld [vmem:[#allocation7 + $0x98] sm:$0xff]  ;;  %v1030_v21 = vpack.c.bf16 %v362_v18, %v359_v17  ;;  %v365_v23 = vld [vmem:[#allocation7 + $0x90] sm:$0xff]  ;;  %v372_v25 = vld [vmem:[#allocation7 + $0xc8] sm:$0xff]  ;;  %s1475_s25 = smov [#allocation11]  }
  0xbc   : > { %v1032_v22 = vpack.c.bf16 %v369_v20, %v366_v19  ;;  %v375_v26 = vld [vmem:[#allocation7 + $0xe0] sm:$0xff]  ;;  %v1034_v27 = vpack.c.bf16 %v368_v24, %v365_v23  ;;  %v374_v30 = vld [vmem:[#allocation7 + $0xd8] sm:$0xff]  ;;  %v381_v32 = vld [vmem:[#allocation7 + $0x110] sm:$0xff]  ;;  %p1383_p1 = pnand %p1382_p12, %p1870_p2  ;;  %s1385_s12 = sshll.u32 %s1475_s25, 4  ;;  %s1386_s12 = int_to_ptr.vmem [resolvable:$false] %s1385_s12 }
  0xbd   : > { %v1036_v28 = vpack.c.bf16 %v375_v26, %v372_v25  ;;  %v371_v29 = vld [vmem:[#allocation7 + $0xc0] sm:$0xff]  ;;  %v378_v31 = vld [vmem:[#allocation7 + $0xf8] sm:$0xff]  ;;  %v377_v35 = vld [vmem:[#allocation7 + $0xf0] sm:$0xff]  ;;  %s1387_s4 = scalar_lea.vmem %s1386_s12, 256  ;;  %p1388_p0 = scmp.lt.s32.totalorder %s1797_s15, %s1386_s12 }
  0xbe   : > { %1027 = vmatpush1.bf16.msra.mxu0 %v1026_v15  ;;  %v1038_v33 = vpack.c.bf16 %v374_v30, %v371_v29  ;;  %v1040_v34 = vpack.c.bf16 %v381_v32, %v378_v31  ;;  %v380_v36 = vld [vmem:[#allocation7 + $0x108] sm:$0xff]  ;;  %v387_v38 = vld [vmem:[#allocation7 + $0x140] sm:$0xff]  ;;  %v386_v42 = vld [vmem:[#allocation7 + $0x138] sm:$0xff]  ;;  %p1384_p4 = pneg %p1383_p1  ;;  %p1389_p8 = scmp.lt.s32.totalorder %s1387_s4, %s1381_s19 }
  0xbf   : > { %1029 = vmatprep.subr.bf16.mxu0 %v1028_v16  ;;  %v384_v37 = vld [vmem:[#allocation7 + $0x128] sm:$0xff]  ;;  %v1042_v39 = vpack.c.bf16 %v380_v36, %v377_v35  ;;  %v383_v40 = vld [vmem:[#allocation7 + $0x120] sm:$0xff]  ;;  %v390_v43 = vld [vmem:[#allocation7 + $0x158] sm:$0xff] }
  0xc0   : > { %v1044_v41 = vpack.c.bf16 %v387_v38, %v384_v37  ;;  %v393_v44 = vld [vmem:[#allocation7 + $0x170] sm:$0xff]  ;;  %v352_v46 = vld [vmem:[#allocation7 + $0x28] sm:$0xff]  ;;  %v355_v47 = vld [vmem:[#allocation7 + $0x40] sm:$0xff]  ;;  %v1046_v50 = vpack.c.bf16 %v386_v42, %v383_v40  ;;  %p1390_p6 = por %p1389_p8, %p1388_p0 }
  0xc1   : > { %v349_v45 = vld [vmem:[#allocation7 + $0x10] sm:$0xff]  ;;  %v358_v49 = vld [vmem:[#allocation7 + $0x58] sm:$0xff]  ;;  %v1048_v51 = vpack.c.bf16 %v393_v44, %v390_v43  ;;  %v392_v53 = vld [vmem:[#allocation7 + $0x168] sm:$0xff] }
  0xc2   : > { %1031 = vmatpush1.bf16.msra.mxu0 %v1030_v21  ;;  %v1053_v48 = vpack.c.bf16 %v352_v46, %v349_v45  ;;  %v389_v52 = vld [vmem:[#allocation7 + $0x150] sm:$0xff]  ;;  %v396_v54 = vld [vmem:[#allocation8 + $0x8] sm:$0xff]  ;;  %v1056_v55 = vpack.c.bf16 %v358_v49, %v355_v47  ;;  %v398_v56 = vld [vmem:[#allocation8 + $0x18] sm:$0xff]  ;;  %p1391_p10 = pnand %p1390_p6, %p1384_p4 }
  0xc3   : > { %1033 = vmatprep.subr.bf16.mxu0 %v1032_v22  ;;  %v361_v57 = vld [vmem:[#allocation7 + $0x70] sm:$0xff]  ;;  %v364_v58 = vld [vmem:[#allocation7 + $0x88] sm:$0xff]  ;;  %v1050_v59 = vpack.c.bf16 %v392_v53, %v389_v52  ;;  %v1076_v60 = vpack.c.bf16 %v398_v56, %v396_v54  ;;  %v395_v61 = vld [vmem:[#allocation8] sm:$0xff] }
  0xc4   : > { %1054 = vmatpush3.bf16.msra.mxu1 %v1053_v48  ;;  %v397_v62 = vld [vmem:[#allocation8 + $0x10] sm:$0xff]  ;;  %v400_v63 = vld [vmem:[#allocation8 + $0x28] sm:$0xff]  ;;  %v1059_v2 = vpack.c.bf16 %v364_v58, %v361_v57  ;;  %v402_v3 = vld [vmem:[#allocation8 + $0x38] sm:$0xff] }
  0xc5   : > { %1055 = vmatprep.subr.bf16.mxu1 %v1473_v1  ;;  %v367_v4 = vld [vmem:[#allocation7 + $0xa0] sm:$0xff]  ;;  %v370_v5 = vld [vmem:[#allocation7 + $0xb8] sm:$0xff]  ;;  %v1078_v7 = vpack.c.bf16 %v397_v62, %v395_v61  ;;  %v1080_v8 = vpack.c.bf16 %v402_v3, %v400_v63  ;;  %v401_v10 = vld [vmem:[#allocation8 + $0x30] sm:$0xff] }
  0xc6   : > { %1035 = vmatpush1.bf16.msra.mxu0 %v1034_v27  ;;  %v1760_v6 = vld [vmem:[%s301_s9] sm:$0xff]  ;;  %v399_v9 = vld [vmem:[#allocation8 + $0x20] sm:$0xff]  ;;  %v404_v11 = vld [vmem:[#allocation8 + $0x48] sm:$0xff]  ;;  %v1062_v12 = vpack.c.bf16 %v370_v5, %v367_v4 }
  0xc7   : > { %1037 = vmatprep.subr.bf16.mxu0 %v1036_v28  ;;  %v406_v13 = vld [vmem:[#allocation8 + $0x58] sm:$0xff]  ;;  %v373_v14 = vld [vmem:[#allocation7 + $0xd0] sm:$0xff]  ;;  %v376_v15 = vld [vmem:[#allocation7 + $0xe8] sm:$0xff]  ;;  %v1082_v16 = vpack.c.bf16 %v401_v10, %v399_v9 }
  0xc8   : > { %1057 = vmatpush3.bf16.msra.mxu1 %v1056_v55  ;;  %v1084_v17 = vpack.c.bf16 %v406_v13, %v404_v11  ;;  %v403_v18 = vld [vmem:[#allocation8 + $0x40] sm:$0xff]  ;;  %v405_v19 = vld [vmem:[#allocation8 + $0x50] sm:$0xff]  ;;  %v408_v20 = vld [vmem:[#allocation8 + $0x68] sm:$0xff]  ;;  %v1065_v21 = vpack.c.bf16 %v376_v15, %v373_v14 }
  0xc9   : > { %1058 = vmatprep.subr.bf16.mxu1 %v1473_v1  ;;  %v410_v22 = vld [vmem:[#allocation8 + $0x78] sm:$0xff]  ;;  %v379_v23 = vld [vmem:[#allocation7 + $0x100] sm:$0xff]  ;;  %v1086_v25 = vpack.c.bf16 %v405_v19, %v403_v18  ;;  %v409_v28 = vld [vmem:[#allocation8 + $0x70] sm:$0xff] }
  0xca   : > { %1039 = vmatpush1.bf16.msra.mxu0 %v1038_v33  ;;  %v382_v24 = vld [vmem:[#allocation7 + $0x118] sm:$0xff]  ;;  %v1088_v26 = vpack.c.bf16 %v410_v22, %v408_v20  ;;  %v407_v27 = vld [vmem:[#allocation8 + $0x60] sm:$0xff]  ;;  %v412_v29 = vld [vmem:[#allocation8 + $0x88] sm:$0xff] }
  0xcb   : > { %1041 = vmatprep.subr.bf16.mxu0 %v1040_v34  ;;  %v1068_v30 = vpack.c.bf16 %v382_v24, %v379_v23  ;;  %v414_v31 = vld [vmem:[#allocation8 + $0x98] sm:$0xff]  ;;  %v385_v32 = vld [vmem:[#allocation7 + $0x130] sm:$0xff]  ;;  %v388_v33 = vld [vmem:[#allocation7 + $0x148] sm:$0xff]  ;;  %v1090_v34 = vpack.c.bf16 %v409_v28, %v407_v27 }
  0xcc   : > { %1060 = vmatpush3.bf16.msra.mxu1 %v1059_v2  ;;  %v1092_v35 = vpack.c.bf16 %v414_v31, %v412_v29  ;;  %v411_v36 = vld [vmem:[#allocation8 + $0x80] sm:$0xff]  ;;  %v413_v37 = vld [vmem:[#allocation8 + $0x90] sm:$0xff]  ;;  %v416_v38 = vld [vmem:[#allocation8 + $0xa8] sm:$0xff] }
  0xcd   : > { %1061 = vmatprep.subr.bf16.mxu1 %v1473_v1  ;;  %v418_v40 = vld [vmem:[#allocation8 + $0xb8] sm:$0xff]  ;;  %v1094_v43 = vpack.c.bf16 %v413_v37, %v411_v36  ;;  %v415_v45 = vld [vmem:[#allocation8 + $0xa0] sm:$0xff]  ;;  %v417_v46 = vld [vmem:[#allocation8 + $0xb0] sm:$0xff] }
  0xce   : > { %1043 = vmatpush1.bf16.msra.mxu0 %v1042_v39  ;;  %v1071_v39 = vpack.c.bf16 %v388_v33, %v385_v32  ;;  %v394_v42 = vld [vmem:[#allocation7 + $0x178] sm:$0xff]  ;;  %v1096_v44 = vpack.c.bf16 %v418_v40, %v416_v38  ;;  %v420_v47 = vld [vmem:[#allocation8 + $0xc8] sm:$0xff]  ;;  %v1098_v52 = vpack.c.bf16 %v417_v46, %v415_v45  ;;  %v419_v54 = vld [vmem:[#allocation8 + $0xc0] sm:$0xff] }
  0xcf   : > { %1045 = vmatprep.subr.bf16.mxu0 %v1044_v41  ;;  %v391_v41 = vld [vmem:[#allocation7 + $0x160] sm:$0xff]  ;;  %v422_v49 = vld [vmem:[#allocation8 + $0xd8] sm:$0xff]  ;;  %v421_v55 = vld [vmem:[#allocation8 + $0xd0] sm:$0xff] }
  0xd0   : > { %1063 = vmatpush3.bf16.msra.mxu1 %v1062_v12  ;;  %v1074_v48 = vpack.c.bf16 %v394_v42, %v391_v41  ;;  %v1100_v53 = vpack.c.bf16 %v422_v49, %v420_v47  ;;  %v424_v57 = vld [vmem:[#allocation8 + $0xe8] sm:$0xff]  ;;  %v426_v58 = vld [vmem:[#allocation8 + $0xf8] sm:$0xff]  ;;  %v423_v61 = vld [vmem:[#allocation8 + $0xe0] sm:$0xff] }
  0xd1   : > { %1064 = vmatprep.subr.bf16.mxu1 %v1473_v1  ;;  %v425_v62 = vld [vmem:[#allocation8 + $0xf0] sm:$0xff]  ;;  %v1776_v2 = vld [vmem:[%s292_s10] sm:$0xff]  ;;  %v430_v4 = vld [vmem:[#allocation10 + $0x18] sm:$0xff] }
  0xd2   : > { %1047 = vmatpush1.bf16.msra.mxu0 %v1046_v50  ;;  %v427_v50 = vld [vmem:[#allocation10] sm:$0xff]  ;;  %v1106_v63 = vpack.c.bf16 %v425_v62, %v423_v61  ;;  %v429_v3 = vld [vmem:[#allocation10 + $0x10] sm:$0xff]  ;;  %v434_v9 = vld [vmem:[#allocation10 + $0x38] sm:$0xff] }
  0xd3   : > { %1049 = vmatprep.subr.bf16.mxu0 %v1048_v51  ;;  %v428_v51 = vld [vmem:[#allocation10 + $0x8] sm:$0xff]  ;;  %v1112_v5 = vpack.c.bf16 %v430_v4, %v429_v3  ;;  %v435_v11 = vld [vmem:[#allocation10 + $0x40] sm:$0xff]  ;;  %v437_v14 = vld [vmem:[#allocation10 + $0x50] sm:$0xff] }
  0xd4   : > { %1066 = vmatpush3.bf16.msra.mxu1 %v1065_v21  ;;  %v1109_v56 = vpack.c.bf16 %v428_v51, %v427_v50  ;;  %v436_v12 = vld [vmem:[#allocation10 + $0x48] sm:$0xff]  ;;  %v438_v15 = vld [vmem:[#allocation10 + $0x58] sm:$0xff]  ;;  %v441_v19 = vld [vmem:[#allocation10 + $0x70] sm:$0xff] }
  0xd5   : > { %1067 = vmatprep.subr.bf16.mxu1 %v1473_v1  ;;  %v1121_v13 = vpack.c.bf16 %v436_v12, %v435_v11  ;;  %v440_v18 = vld [vmem:[#allocation10 + $0x68] sm:$0xff]  ;;  %v442_v21 = vld [vmem:[#allocation10 + $0x78] sm:$0xff] }
  0xd6   : > { %1051 = vmatpush1.bf16.msra.mxu0 %v1050_v59  ;;  %v1102_v59 = vpack.c.bf16 %v421_v55, %v419_v54  ;;  %v1130_v22 = vpack.c.bf16 %v442_v21, %v441_v19 }
  0xd7   : > { %1077 = vmatprep.subr.bf16.mxu0 %v1076_v60  ;;  %v1104_v60 = vpack.c.bf16 %v426_v58, %v424_v57 }
  0xd8   : > { %1069 = vmatpush3.bf16.msra.mxu1 %v1068_v30  ;;  %v910_v30 = vld [vmem:[%s1844_s5] ss:$0 sm:$0xff] }
  0xd9   : > { %511 = vmatmul.mubr.f32.vlgmr.msra.gmra.mrb[0].mxu0 %v1760_v6  ;;  %1070 = vmatprep.subr.bf16.mxu1 %v1473_v1 }
  0xda   : > { %1079 = vmatpush1.bf16.msra.mxu0 %v1078_v7  ;;  %651 = vmatprep.mubr.f32.mxu0 %v1472_v0  ;;  %v432_v7 = vld [vmem:[#allocation10 + $0x28] sm:$0xff] }
  0xdb   : > { %1081 = vmatprep.subr.bf16.mxu0 %v1080_v8 }
  0xdc   : > { %1072 = vmatpush3.bf16.msra.mxu1 %v1071_v39 }
  0xdd   : > { %1073 = vmatprep.subr.bf16.mxu1 %v1473_v1 }
  0xde   : > { %1083 = vmatpush1.bf16.msra.mxu0 %v1082_v16  ;;  %v1124_v16 = vpack.c.bf16 %v438_v15, %v437_v14 }
  0xdf   : > { %1085 = vmatprep.subr.bf16.mxu0 %v1084_v17  ;;  %v439_v17 = vld [vmem:[#allocation10 + $0x60] sm:$0xff] }
  0xe0   : > { %1075 = vmatpush3.bf16.msra.mxu1 %v1074_v48  ;;  %v1127_v20 = vpack.c.bf16 %v440_v18, %v439_v17 }
  0xe1   : > { %1108 = vmatprep.subr.bf16.mxu1 %v1473_v1 }
  0xe2   : > { %1087 = vmatpush1.bf16.msra.mxu0 %v1086_v25 }
  0xe3   : > { %1089 = vmatprep.subr.bf16.mxu0 %v1088_v26  ;;  %983 = vmatmul.mubr.f32.vlgmr.msra.gmra.mrb[0].mxu1 %v1760_v6  ;;  %v431_v6 = vld [vmem:[#allocation10 + $0x20] sm:$0xff] }
  0xe4   : > { %1110 = vmatpush3.bf16.msra.mxu1 %v1109_v56  ;;  %1017 = vmatprep.mubr.msk.f32.mxu1 %vm1474_vm0, %v1472_v0  ;;  %v1115_v8 = vpack.c.bf16 %v432_v7, %v431_v6  ;;  %v433_v0 = vld [vmem:[#allocation10 + $0x30] sm:$0xff] }
  0xe5   : > { %1111 = vmatprep.subr.bf16.mxu1 %v1473_v1  ;;  %v1118_v10 = vpack.c.bf16 %v434_v9, %v433_v0 }
  0xe6   : > { %1091 = vmatpush1.bf16.msra.mxu0 %v1090_v34 }
  0xe7   : > { %1093 = vmatprep.subr.bf16.mxu0 %v1092_v35 }
  0xe8   : > { %1113 = vmatpush3.bf16.msra.mxu1 %v1112_v5 }
  0xe9   : > { %1114 = vmatprep.subr.bf16.mxu1 %v1473_v1 }
  0xea   : > { %1095 = vmatpush1.bf16.msra.mxu0 %v1094_v43 }
  0xeb   : > { %1097 = vmatprep.subr.bf16.mxu0 %v1096_v44 }
  0xec   : > { %1116 = vmatpush3.bf16.msra.mxu1 %v1115_v8 }
  0xed   : > { %1117 = vmatprep.subr.bf16.mxu1 %v1473_v1 }
  0xee   : > { %1099 = vmatpush1.bf16.msra.mxu0 %v1098_v52 }
  0xef   : > { %1101 = vmatprep.subr.bf16.mxu0 %v1100_v53 }
  0xf0   : > { %1119 = vmatpush3.bf16.msra.mxu1 %v1118_v10 }
  0xf1   : > { %1120 = vmatprep.subr.bf16.mxu1 %v1473_v1 }
  0xf2   : > { %1103 = vmatpush1.bf16.msra.mxu0 %v1102_v59 }
  0xf3   : > { %1105 = vmatprep.subr.bf16.mxu0 %v1104_v60 }
  0xf4   : > { %1122 = vmatpush3.bf16.msra.mxu1 %v1121_v13 }
  0xf5   : > { %1123 = vmatprep.subr.bf16.mxu1 %v1473_v1 }
  0xf6   : > { %1107 = vmatpush1.bf16.msra.mxu0 %v1106_v63 }
  0xf8   : > { %1125 = vmatpush3.bf16.msra.mxu1 %v1124_v16 }
  0xf9   : > { %652 = vmatmul.mubr.f32.vlgmr.msra.gmra.mrb[0].mxu0 %v1776_v2  ;;  %1126 = vmatprep.subr.bf16.mxu1 %v1473_v1 }
  0xfc   : > { %1128 = vmatpush3.bf16.msra.mxu1 %v1127_v20 }
  0xfd   : > { %1129 = vmatprep.subr.bf16.mxu1 %v1473_v1 }
 0x100   : > { %1131 = vmatpush3.bf16.msra.mxu1 %v1130_v22 }
 0x1cc   : > { %v653_v23 = vpop.f32.mrb[0].mxu0 }
 0x1cd   : > { %v909_v24 = vmul.f32 -1.442695, %v653_v23  ;;  %v655_v25 = vpop.f32.mrb[1].mxu0 }
 0x1ce   : > { %v672_v31 = vsub.f32 %v655_v25, %v910_v30 }
 0x1cf   : > { %1227 = vpow2.f32 %v909_v24 }
 0x1d0   : > { %v911_v1 = vmul.f32 -1.442695, %v672_v31 }
 0x1d9   : > { %v1228_v26 = vpop.eup %1227 }
 0x1da   : > { %v662_v27 = vadd.f32 1.0, %v1228_v26 }
 0x1dc   : > { %1229 = vrcp.f32 %v662_v27 }
 0x1dd   : > { %1231 = vpow2.f32 %v911_v1 }
 0x1e6   : > { %v1230_v28 = vpop.eup %1229 }
 0x1e7   : > { %v679_v29 = vmul.f32 %v1230_v28, %v1776_v2  ;;  %v1232_v32 = vpop.eup %1231 }
 0x1e8   : > { %v676_v33 = vadd.f32 1.0, %v1232_v32 }
 0x1e9   : > { %1018 = vmatmul.mubr.f32.vlgmr.msra.gmra.mrb[0].mxu1 %v679_v29 }
 0x1ea   : > { %1233 = vrcp.f32 %v676_v33 }
 0x1f4   : > { %v1234_v36 = vpop.eup %1233 }
 0x1f5   : > { %v752_v37 = vsub.f32 1.0, %v1234_v36 }
 0x1f7   : > { %v753_v40 = vmul.f32 %v752_v37, %v1776_v2 }
 0x2bc   : > { %v746_v34 = vpop.f32.mrb[0].mxu1 }
 0x2bd   : > { %1235 = vtanh.f32 %v746_v34  ;;  %v1019_v35 = vpop.f32.mrb[1].mxu1 }
 0x2c7   : > { %v1236_v38 = vpop.eup %1235 }
 0x2c8   : > { %v754_v39 = vmul.f32 %v1236_v38, %v1234_v36 }
 0x2ca   : > { %v755_v41 = vadd.f32 %v754_v39, %v753_v40 }
 0x2cc   : > { %756 = vst [vmem:[%s346_s8] sm:$0xff] %v755_v41 }
 0x2cd   : > { %1394 = shalt.err (!%p1391_p10)
}
 0x2ce   : > { %s1395_s2 = scalar_lea.hbm %s1795_s11, 128  ;;  %s1399_s29 = scalar_lea.hbm %s1845_s6, 256 }
 0x2cf   : > { %p1396_p13 = scmp.ne.s32.totalorder %s1795_s11, %s1395_s2  ;;  %p1400_p9 = scmp.lt.u32.totalorder %s1795_s11, %s1845_s6 }
 0x2d0   : > { %p1401_p3 = scmp.lt.u32.totalorder %s1399_s29, %s1395_s2  ;;  %p1403_p12 = scmp.lt.u32.totalorder %s1395_s2, %s1795_s11 }
 0x2d1   : > { %p1397_p5 = pnand %p1396_p13, %p1870_p2 }
 0x2d2   : > { %p1402_p7 = por %p1401_p3, %p1400_p9 }
 0x2d3   : > { %p1398_p11 = pneg %p1397_p5 }
 0x2d4   : > { %p1404_p1 = por %p1403_p12, %p1402_p7 }
 0x2d6   : > { %p1405_p4 = pnand %p1404_p1, %p1398_p11 }
 0x2d8   : > { %1408 = shalt.err (!%p1405_p4)
}
 0x2d9   : > { %1152 = dma.vmem_to_hbm [thread:$0]  (%p1870_p2), %s1797_s15, 128, %s1795_s11, %s758_s7  }
 0x2da PF: > { %s783_s27 = sand.u32 1, %s1447_s21   ;;  %p1871_p0 = scmp.ne.s32.totalorder %s1854_s28, 0 }
 0x2db   : > { %p1872_p8 = scmp.ge.s32.totalorder %s1459_s24, 2  ;;  %s784_s26 = scalar_lea.sflag [#allocation4], %s783_s27 }
 0x2dd   : > { %p1172_p6 = pnand %p1872_p8, %p1871_p0 }
 0x2df   : > { %1442 = dma.done.wait (!%p1172_p6), %s784_s26, 128  }
 0x2e0   : > { %1444 = vsyncadd (!%p1172_p6), %s784_s26, 4294967168  ;;  %p23_p10 = scmp.ge.s32.totalorder %s1639_s30, 4   ;;  %s1873_s21 = smov %s1451_s22 }
 0x2e1   : > { %s1874_s22 = smov %s1455_s23  ;;  %s1875_s23 = smov %s1649_s13 }
 0x2e2   : > { %s1876_s24 = smov %s1639_s30  ;;  %25 = sbr.rel (!%p23_p10) target bundleno = 12 (0xc), region = 114 }
 0x2e9   :  { %789 = vsyncpa [#allocation3], 1 }
 0x2ea   :  { %791 = vsyncpa [#allocation3 + $0x1], 1 }
 0x2eb   :  { %792 = vsyncpa [#allocation6], 1 }
 0x2ec   :  { %794 = vsyncpa [#allocation6 + $0x1], 1 }
 0x2ed   :  { %795 = vsyncpa [#allocation9], 1 }
 0x2ee   :  { %796 = vsyncpa [#allocation4], 1 }
 0x2ef   :  { %798 = vsyncpa [#allocation4 + $0x1], 1 }

// kernel: tpu_custom_call.1
= control target key start
LH: loop header
LB: loop body
LE: loop exit
PB: predicated region body
PF: predicated region fallthrough
CT: control target
= control target key end

     0   :  { %s1839_s0 = inlined_call_operand.hbm [shape: f32[16,128], index: 0, kind: input, shape index: {}]   ;;  %s1840_s1 = inlined_call_operand.hbm [shape: f32[16,128], index: 1, kind: input, shape index: {}]   ;;  %s1841_s2 = inlined_call_operand.hbm [shape: f32[128,384], index: 2, kind: input, shape index: {}]   ;;  %s1842_s3 = inlined_call_operand.hbm [shape: f32[128,256], index: 3, kind: input, shape index: {}]   ;;  %s1843_s4 = inlined_call_operand.hbm [shape: f32[128,128], index: 4, kind: input, shape index: {}]   ;;  %s1844_s5 = inlined_call_operand.vmem [shape: f32[1,128], index: 5, kind: input, shape index: {}]   ;;  %s1845_s6 = inlined_call_operand.hbm [shape: f32[16,128], index: 6, kind: output, shape index: {}]  }
   0x1   :  { %1850 = sst [smem:[#allocation17_spill]] %s1841_s2 }
   0x2   :  { %1851 = sst [smem:[#allocation18_spill]] %s1842_s3 }
   0x3   :  { %1852 = sst [smem:[#allocation19_spill]] %s1843_s4 }
   0x4   :  { %11 = vsyncpa [#allocation3], 0 }
   0x5   :  { %13 = vsyncpa [#allocation3 + $0x1], 0 }
   0x6   :  { %14 = vsyncpa [#allocation6], 0 }
   0x7   :  { %16 = vsyncpa [#allocation6 + $0x1], 0 }
   0x8   :  { %17 = vsyncpa [#allocation9], 0 }
   0x9   :  { %18 = vsyncpa [#allocation4], 0 }
   0xa   :  { %20 = vsyncpa [#allocation4 + $0x1], 0  ;;  %s1511_s21 = smov 0   ;;  %s1513_s22 = smov 0  }
   0xb   :  { %s1515_s23 = smov 0   ;;  %s1517_s24 = smov 0  }
   0xc LB: > { %s1532_s25 = sadd.s32 4294967295, %s1459_s24   ;;  %s892_s26 = sadd.s32 4294967294, %s1459_s24   ;;  %s1459_s24 = sphi %s1517_s24, %s1876_s24   ;;  %s1455_s23 = sphi %s1515_s23, %s1875_s23   ;;  %s1451_s22 = sphi %s1513_s22, %s1874_s22   ;;  %s1447_s21 = sphi %s1511_s21, %s1873_s21  }
   0xd   : > { %p46_p0 = scmp.ne.s32.totalorder %s1451_s22, %s1447_s21  ;;  %p1846_p1 = scmp.eq.s32.totalorder %s1532_s25, 0 }
   0xe   : > { %p186_p3 = scmp.eq.s32.totalorder %s892_s26, 1  ;;  %p893_p5 = scmp.ge.s32.totalorder %s1459_s24, 1 }
   0xf   : > { %p1541_p4 = por %p1846_p1, %p46_p0  ;;  %p193_p7 = scmp.lt.s32.totalorder %s1459_s24, 3 }
  0x10   : > { %p1546_p6 = por %p186_p3, %p46_p0  ;;  %s1461_s30 = smov [#allocation7]  }
  0x11   : > { %s1853_s27 = scalar_select %p1541_p4, 1, 0 }
  0x12   : > { %s1854_s28 = scalar_select %p1546_p6, 1, 0 }
  0x13   : > { %p1551_p8 = pnand %p893_p5, %p193_p7  ;;  %s205_s7 = sshll.u32 %s1461_s30, 4  ;;  %s1555_s7 = int_to_ptr.vmem [resolvable:$true] %s205_s7 }
  0x14   : > { %s1462_s9 = smov [#allocation8]   ;;  %s1857_s2 = sld [smem:[#allocation17_spill]] }
  0x15   : > { %s1855_s29 = scalar_select %p1551_p8, 1, 0 }
  0x16   : > { %p1154_p9 = pneg %p1551_p8  ;;  %s218_s10 = sshll.u32 %s1462_s9, 4  ;;  %s1566_s10 = int_to_ptr.vmem [resolvable:$true] %s218_s10 }
  0x18   : > { %p1562_p11 = pnand %p1154_p9, %p1846_p1 }
  0x1a   : > { %s1237_s13 = scalar_lea.hbm %s1857_s2, 6144  ;;  %p1576_p13 = pneg %p1562_p11 }
  0x1b   : > { %p1238_p12 = scmp.ne.s32.totalorder %s1857_s2, %s1237_s13  ;;  %p1244_p5 = scmp.lt.u32.totalorder %s1237_s13, %s1857_s2 }
  0x1d   : > { %p1240_p0 = pnand %p1576_p13, %p1238_p12 }
  0x1f   : > { %p1241_p3 = pneg %p1240_p0 }
  0x21   : > { %p1246_p7 = pnand %p1244_p5, %p1241_p3 }
  0x23   : > { %1249 = shalt.err (!%p1246_p7)
}
  0x24   : > { %s1250_s19 = scalar_lea.vmem %s1555_s7, 6144  ;;  %p1258_p2 = scmp.lt.s32.totalorder %s1555_s7, %s1555_s7 }
  0x25   : > { %p1251_p9 = scmp.ne.s32.totalorder %s1555_s7, %s1250_s19  ;;  %p1259_p6 = scmp.lt.s32.totalorder %s1250_s19, %s1250_s19 }
  0x27   : > { %p1253_p10 = pnand %p1251_p9, %p1576_p13  ;;  %p1260_p12 = por %p1259_p6, %p1258_p2 }
  0x29   : > { %p1254_p1 = pneg %p1253_p10 }
  0x2b   : > { %p1261_p0 = pnand %p1260_p12, %p1254_p1 }
  0x2d   : > { %1264 = shalt.err (!%p1261_p0)
}
  0x2e   : > { %s1463_s20 = smov 384   ;;  %s1464_s26 = smov 24  }
  0x2f   : > { %1157 = dma.hbm_to_vmem [thread:$0]  (!%p1562_p11), %s1857_s2, 6144, %s1555_s7, [#allocation6], %s1463_s20, %s1463_s20, %s1464_s26  }
  0x30   : > { %s1859_s3 = sld [smem:[#allocation18_spill]] }
  0x36   : > { %s1265_s13 = scalar_lea.hbm %s1859_s3, 4096 }
  0x37   : > { %p1266_p2 = scmp.ne.s32.totalorder %s1859_s3, %s1265_s13  ;;  %p1272_p10 = scmp.lt.u32.totalorder %s1265_s13, %s1859_s3 }
  0x39   : > { %p1268_p1 = pnand %p1266_p2, %p1576_p13 }
  0x3b   : > { %p1269_p6 = pneg %p1268_p1 }
  0x3d   : > { %p1274_p3 = pnand %p1272_p10, %p1269_p6 }
  0x3f   : > { %1277 = shalt.err (!%p1274_p3)
}
  0x40   : > { %s1278_s7 = scalar_lea.vmem %s1566_s10, 4096  ;;  %p1286_p12 = scmp.lt.s32.totalorder %s1566_s10, %s1566_s10 }
  0x41   : > { %p1279_p5 = scmp.ne.s32.totalorder %s1566_s10, %s1278_s7  ;;  %p1287_p0 = scmp.lt.s32.totalorder %s1278_s7, %s1278_s7 }
  0x43   : > { %p1281_p7 = pnand %p1279_p5, %p1576_p13  ;;  %p1288_p2 = por %p1287_p0, %p1286_p12 }
  0x45   : > { %p1282_p9 = pneg %p1281_p7 }
  0x47   : > { %p1289_p1 = pnand %p1288_p2, %p1282_p9 }
  0x49   : > { %1292 = shalt.err (!%p1289_p1)
}
  0x4a   : > { %s1465_s19 = smov 256   ;;  %s1466_s20 = smov 16  }
  0x4b   : > { %1160 = dma.hbm_to_vmem [thread:$0]  (!%p1562_p11), %s1859_s3, 4096, %s1566_s10, [#allocation9], %s1465_s19, %s1465_s19, %s1466_s20  }
  0x4c   : > { %s1467_s9 = smov [#allocation10]   ;;  %s1860_s4 = sld [smem:[#allocation19_spill]] }
  0x4d   : > { %s231_s11 = sshll.u32 %s1467_s9, 4  ;;  %s232_s11 = int_to_ptr.vmem [resolvable:$true] %s231_s11 }
  0x52   : > { %s1293_s14 = scalar_lea.hbm %s1860_s4, 2048 }
  0x53   : > { %p1294_p6 = scmp.ne.s32.totalorder %s1860_s4, %s1293_s14  ;;  %p1300_p5 = scmp.lt.u32.totalorder %s1293_s14, %s1860_s4 }
  0x55   : > { %p1296_p10 = pnand %p1294_p6, %p1576_p13 }
  0x57   : > { %p1297_p3 = pneg %p1296_p10 }
  0x59   : > { %p1302_p7 = pnand %p1300_p5, %p1297_p3 }
  0x5b   : > { %1305 = shalt.err (!%p1302_p7)
}
  0x5c   : > { %s1306_s10 = scalar_lea.vmem %s232_s11, 2048  ;;  %p1314_p2 = scmp.lt.s32.totalorder %s232_s11, %s232_s11 }
  0x5d   : > { %p1307_p9 = scmp.ne.s32.totalorder %s232_s11, %s1306_s10  ;;  %p1315_p1 = scmp.lt.s32.totalorder %s1306_s10, %s1306_s10 }
  0x5f   : > { %p1309_p12 = pnand %p1307_p9, %p1576_p13  ;;  %p1316_p4 = por %p1315_p1, %p1314_p2 }
  0x61   : > { %p1310_p0 = pneg %p1309_p12 }
  0x63   : > { %p1317_p8 = pnand %p1316_p4, %p1310_p0 }
  0x65   : > { %1320 = shalt.err (!%p1317_p8)
}
  0x66   : > { %s1468_s19 = smov 128   ;;  %s1469_s16 = smov 8  }
  0x67   : > { %1163 = dma.hbm_to_vmem [thread:$0]  (!%p1562_p11), %s1860_s4, 2048, %s232_s11, [#allocation9], %s1468_s19, %s1468_s19, %s1469_s16  }
  0x68   : > { %s1639_s30 = sadd.s32 1, %s1459_s24   ;;  %s33_s12 = sadd.s32 1, %s1455_s23 }
  0x69   : > { %s30_s9 = ssub.s32 %s1459_s24, %s1639_s30  ;;  %p40_p8 = scmp.ne.s32.totalorder %s1455_s23, %s1451_s22 }
  0x6a   : > { %p31_p4 = scmp.eq.s32.totalorder %s30_s9, 0  ;;  %p41_p13 = scmp.eq.s32.totalorder %s1459_s24, 0 }
  0x6b   : > { %p1178_p6 = scmp.lt.s32.totalorder %s1459_s24, 2  ;;  %p1861_p3 = scmp.eq.s32.totalorder %s1532_s25, 1 }
  0x6c   : > { %s1649_s13 = scalar_select %p31_p4, %s1455_s23, %s33_s12  }
  0x6d   : > { %p42_p10 = por %p41_p13, %p40_p8  ;;  %p1653_p5 = por %p1861_p3, %p40_p8 }
  0x6e   : > { %s248_s8 = sand.u32 1, %s1455_s23   ;;  %s899_s15 = sshll.u32 %s1459_s24, 7 }
  0x6f   : > { %s1862_s14 = scalar_select %p1653_p5, 1, 0 }
  0x70   : > { %s1659_s11 = sshll.u32 %s248_s8, 3  ;;  %s1664_s7 = scalar_lea.hbm %s1839_s0, %s899_s15 }
  0x71   : > { %s252_s10 = scalar_lea.vmem [#allocation2], %s1659_s11  ;;  %p1667_p11 = pnand %p1178_p6, %p42_p10 }
  0x72   : > { %s259_s19 = sshll.u32 %s252_s10, 4  ;;  %s1676_s9 = scalar_lea.hbm %s1840_s1, %s899_s15  ;;  %s1671_s19 = int_to_ptr.vmem [resolvable:$true] %s259_s19 }
  0x73   : > { %s249_s12 = scalar_lea.sflag [#allocation3], %s248_s8  ;;  %s1321_s17 = scalar_lea.hbm %s1664_s7, 128 }
  0x74   : > { %p1322_p7 = scmp.ne.s32.totalorder %s1664_s7, %s1321_s17  ;;  %p1323_p9 = pneg %p1667_p11 }
  0x75   : > { %s1326_s2 = scalar_lea.hbm %s1839_s0, 256  ;;  %p1327_p2 = scmp.lt.u32.totalorder %s1664_s7, %s1839_s0 }
  0x76   : > { %p1324_p12 = pnand %p1323_p9, %p1322_p7  ;;  %p1328_p1 = scmp.lt.u32.totalorder %s1326_s2, %s1321_s17 }
  0x77   : > { %p1330_p8 = scmp.lt.u32.totalorder %s1321_s17, %s1664_s7 }
  0x78   : > { %p1325_p0 = pneg %p1324_p12  ;;  %p1329_p4 = por %p1328_p1, %p1327_p2 }
  0x7a   : > { %p1331_p13 = por %p1330_p8, %p1329_p4 }
  0x7c   : > { %p1332_p6 = pnand %p1331_p13, %p1325_p0 }
  0x7e   : > { %1335 = shalt.err (!%p1332_p6)
}
  0x7f   : > { %s1336_s8 = scalar_lea.vmem %s1671_s19, 128  ;;  %s1470_s15 = smov [#allocation2]  }
  0x80   : > { %p1337_p10 = scmp.ne.s32.totalorder %s1671_s19, %s1336_s8  ;;  %s1341_s20 = sshll.u32 %s1470_s15, 4  ;;  %s1342_s20 = int_to_ptr.vmem [resolvable:$false] %s1341_s20 }
  0x81   : > { %s1343_s3 = scalar_lea.vmem %s1342_s20, 256  ;;  %p1344_p12 = scmp.lt.s32.totalorder %s1671_s19, %s1342_s20 }
  0x82   : > { %p1339_p3 = pnand %p1337_p10, %p1323_p9  ;;  %p1345_p2 = scmp.lt.s32.totalorder %s1343_s3, %s1336_s8 }
  0x84   : > { %p1340_p7 = pneg %p1339_p3  ;;  %p1346_p1 = por %p1345_p2, %p1344_p12 }
  0x86   : > { %p1347_p4 = pnand %p1346_p1, %p1340_p7 }
  0x88   : > { %1350 = shalt.err (!%p1347_p4)
}
  0x89   : > { %1167 = dma.hbm_to_vmem [thread:$0]  (!%p1667_p11), %s1664_s7, 128, %s1671_s19, %s249_s12  }
  0x8a   : > { %s266_s2 = sand.u32 1, %s1459_s24   ;;  %s270_s4 = scalar_lea.vmem [#allocation5], %s1659_s11 }
  0x8b   : > { %s277_s26 = sshll.u32 %s270_s4, 4  ;;  %s267_s17 = scalar_lea.sflag [#allocation6], %s266_s2  ;;  %s278_s26 = int_to_ptr.vmem [resolvable:$true] %s277_s26 }
  0x8c   : > { %s1351_s18 = scalar_lea.hbm %s1676_s9, 128  ;;  %s1356_s15 = scalar_lea.hbm %s1840_s1, 256 }
  0x8d   : > { %p1352_p0 = scmp.ne.s32.totalorder %s1676_s9, %s1351_s18  ;;  %p1357_p6 = scmp.lt.u32.totalorder %s1676_s9, %s1840_s1 }
  0x8e   : > { %p1358_p10 = scmp.lt.u32.totalorder %s1356_s15, %s1351_s18  ;;  %p1360_p7 = scmp.lt.u32.totalorder %s1351_s18, %s1676_s9 }
  0x8f   : > { %p1354_p8 = pnand %p1352_p0, %p1323_p9 }
  0x90   : > { %p1359_p3 = por %p1358_p10, %p1357_p6 }
  0x91   : > { %p1355_p13 = pneg %p1354_p8 }
  0x92   : > { %p1361_p12 = por %p1360_p7, %p1359_p3 }
  0x94   : > { %p1362_p2 = pnand %p1361_p12, %p1355_p13 }
  0x96   : > { %1365 = shalt.err (!%p1362_p2)
}
  0x97   : > { %s1366_s11 = scalar_lea.vmem %s278_s26, 128  ;;  %s1471_s7 = smov [#allocation5]  }
  0x98   : > { %p1367_p1 = scmp.ne.s32.totalorder %s278_s26, %s1366_s11  ;;  %s1371_s19 = sshll.u32 %s1471_s7, 4  ;;  %s1372_s19 = int_to_ptr.vmem [resolvable:$false] %s1371_s19 }
  0x99   : > { %s1373_s12 = scalar_lea.vmem %s1372_s19, 256  ;;  %p1374_p8 = scmp.lt.s32.totalorder %s278_s26, %s1372_s19 }
  0x9a   : > { %p1369_p4 = pnand %p1367_p1, %p1323_p9  ;;  %p1375_p5 = scmp.lt.s32.totalorder %s1373_s12, %s1366_s11 }
  0x9c   : > { %p1370_p0 = pneg %p1369_p4  ;;  %p1376_p6 = por %p1375_p5, %p1374_p8 }
  0x9e   : > { %p1377_p10 = pnand %p1376_p6, %p1370_p0 }
  0xa0   : > { %1380 = shalt.err (!%p1377_p10)
}
  0xa1   : > { %1170 = dma.hbm_to_vmem [thread:$0]  (!%p1667_p11), %s1676_s9, 128, %s278_s26, %s267_s17  }
  0xa2   : > { %p1864_p13 = scmp.ne.s32.totalorder %s1855_s29, 0 }
  0xa3   : > { %s1727_s2 = sand.u32 (!%p1864_p13), 1, %s1451_s22   ;;  %p1865_p5 = scmp.ne.s32.totalorder (!%p1864_p13), %s1853_s27, 0 }
  0xa4   : > { %286 = sbr.rel (%p1864_p13) target bundleno = 730 (0x2da), region = 44  ;;  %s1730_s4 = sshll.u32 (!%p1864_p13), %s1727_s2, 3 }
  0xa5   : > { %s289_s18 = scalar_lea.sflag (!%p1864_p13), [#allocation3], %s1727_s2  ;;  %s292_s10 = scalar_lea.vmem (!%p1864_p13), [#allocation2], %s1730_s4 }
  0xab   : > { %1426 = dma.done.wait (%p1865_p5), %s289_s18, 128  }
  0xac   : > { %1428 = vsyncadd (%p1865_p5), %s289_s18, 4294967168  ;;  %s297_s29 = sand.u32 1, %s1532_s25   ;;  %s301_s9 = scalar_lea.vmem [#allocation5], %s1730_s4 }
  0xad   : > { %s298_s16 = scalar_lea.sflag [#allocation6], %s297_s29 }
  0xae   : > { %1430 = dma.done.wait (%p1865_p5), %s298_s16, 128  }
  0xaf   : > { %1432 = vsyncadd (%p1865_p5), %s298_s16, 4294967168  ;;  %p1866_p11 = scmp.eq.s32.totalorder %s1532_s25, 0 }
  0xb1   : > { %1434 = dma.done.wait (%p1866_p11), [#allocation6], 6144   ;;  %p1867_p9 = pmov %p1866_p11 }
  0xb3   : > { %1436 = vsyncadd (%p1867_p9), [#allocation6], 4294961152  ;;  %p1868_p3 = pmov %p1867_p9 }
  0xb5   : > { %1438 = dma.done.wait (%p1868_p3), [#allocation9], 6144   ;;  %p1869_p7 = pmov %p1868_p3 }
  0xb6   : > { %v1472_v0 = vmov 0.0   ;;  %v1473_v1 = vmov 0.0|0.0   ;;  %vm1474_vm0 = vmmov 0   ;;  %v348_v2 = vld [vmem:[#allocation7 + $0x8] sm:$0xff]  ;;  %v351_v3 = vld [vmem:[#allocation7 + $0x20] sm:$0xff]  ;;  %v350_v6 = vld [vmem:[#allocation7 + $0x18] sm:$0xff] }
  0xb7   : > { %1440 = vsyncadd (%p1869_p7), [#allocation9], 4294961152  ;;  %510 = vmatprep.mubr.f32.mxu0 %v1472_v0  ;;  %1052 = vmatprep.subr.bf16.mxu1 %v1473_v1  ;;  %v347_v4 = vld [vmem:[#allocation7] sm:$0xff]  ;;  %v1020_v5 = vpack.c.bf16 %v351_v3, %v348_v2  ;;  %v354_v7 = vld [vmem:[#allocation7 + $0x38] sm:$0xff]  ;;  %s913_s17 = sshll.u32 %s1532_s25, 7  ;;  %s346_s8 = scalar_lea.vmem [#allocation11], %s1730_s4 }
  0xb8   : > { %982 = vmatprep.mubr.msk.f32.mxu1 %vm1474_vm0, %v1472_v0  ;;  %v357_v8 = vld [vmem:[#allocation7 + $0x50] sm:$0xff]  ;;  %v1022_v9 = vpack.c.bf16 %v350_v6, %v347_v4  ;;  %v356_v12 = vld [vmem:[#allocation7 + $0x48] sm:$0xff]  ;;  %v363_v14 = vld [vmem:[#allocation7 + $0x80] sm:$0xff]  ;;  %s771_s15 = sshll.u32 %s346_s8, 4  ;;  %s1795_s11 = scalar_lea.hbm %s1845_s6, %s913_s17  ;;  %s1797_s15 = int_to_ptr.vmem [resolvable:$true] %s771_s15 }
  0xb9   : > { %v1024_v10 = vpack.c.bf16 %v357_v8, %v354_v7  ;;  %v353_v11 = vld [vmem:[#allocation7 + $0x30] sm:$0xff]  ;;  %v360_v13 = vld [vmem:[#allocation7 + $0x68] sm:$0xff]  ;;  %1021 = vmatprep.subr.bf16.mxu0 %v1020_v5  ;;  %v359_v17 = vld [vmem:[#allocation7 + $0x60] sm:$0xff]  ;;  %s758_s7 = scalar_lea.sflag [#allocation4], %s1727_s2  ;;  %s1381_s19 = scalar_lea.vmem %s1797_s15, 128 }
  0xba   : > { %1023 = vmatpush1.bf16.msra.mxu0 %v1022_v9  ;;  %v1026_v15 = vpack.c.bf16 %v356_v12, %v353_v11  ;;  %v1028_v16 = vpack.c.bf16 %v363_v14, %v360_v13  ;;  %v362_v18 = vld [vmem:[#allocation7 + $0x78] sm:$0xff]  ;;  %v369_v20 = vld [vmem:[#allocation7 + $0xb0] sm:$0xff]  ;;  %v368_v24 = vld [vmem:[#allocation7 + $0xa8] sm:$0xff]  ;;  %p1382_p12 = scmp.ne.s32.totalorder %s1797_s15, %s1381_s19  ;;  %p1870_p2 = scmp.ne.s32.totalorder %s1862_s14, 0 }
  0xbb   : > { %1025 = vmatprep.subr.bf16.mxu0 %v1024_v10  ;;  %v366_v19 = vld [vmem:[#allocation7 + $0x98] sm:$0xff]  ;;  %v1030_v21 = vpack.c.bf16 %v362_v18, %v359_v17  ;;  %v365_v23 = vld [vmem:[#allocation7 + $0x90] sm:$0xff]  ;;  %v372_v25 = vld [vmem:[#allocation7 + $0xc8] sm:$0xff]  ;;  %s1475_s25 = smov [#allocation11]  }
  0xbc   : > { %v1032_v22 = vpack.c.bf16 %v369_v20, %v366_v19  ;;  %v375_v26 = vld [vmem:[#allocation7 + $0xe0] sm:$0xff]  ;;  %v1034_v27 = vpack.c.bf16 %v368_v24, %v365_v23  ;;  %v374_v30 = vld [vmem:[#allocation7 + $0xd8] sm:$0xff]  ;;  %v381_v32 = vld [vmem:[#allocation7 + $0x110] sm:$0xff]  ;;  %p1383_p1 = pnand %p1382_p12, %p1870_p2  ;;  %s1385_s12 = sshll.u32 %s1475_s25, 4  ;;  %s1386_s12 = int_to_ptr.vmem [resolvable:$false] %s1385_s12 }
  0xbd   : > { %v1036_v28 = vpack.c.bf16 %v375_v26, %v372_v25  ;;  %v371_v29 = vld [vmem:[#allocation7 + $0xc0] sm:$0xff]  ;;  %v378_v31 = vld [vmem:[#allocation7 + $0xf8] sm:$0xff]  ;;  %v377_v35 = vld [vmem:[#allocation7 + $0xf0] sm:$0xff]  ;;  %s1387_s4 = scalar_lea.vmem %s1386_s12, 256  ;;  %p1388_p0 = scmp.lt.s32.totalorder %s1797_s15, %s1386_s12 }
  0xbe   : > { %1027 = vmatpush1.bf16.msra.mxu0 %v1026_v15  ;;  %v1038_v33 = vpack.c.bf16 %v374_v30, %v371_v29  ;;  %v1040_v34 = vpack.c.bf16 %v381_v32, %v378_v31  ;;  %v380_v36 = vld [vmem:[#allocation7 + $0x108] sm:$0xff]  ;;  %v387_v38 = vld [vmem:[#allocation7 + $0x140] sm:$0xff]  ;;  %v386_v42 = vld [vmem:[#allocation7 + $0x138] sm:$0xff]  ;;  %p1384_p4 = pneg %p1383_p1  ;;  %p1389_p8 = scmp.lt.s32.totalorder %s1387_s4, %s1381_s19 }
  0xbf   : > { %1029 = vmatprep.subr.bf16.mxu0 %v1028_v16  ;;  %v384_v37 = vld [vmem:[#allocation7 + $0x128] sm:$0xff]  ;;  %v1042_v39 = vpack.c.bf16 %v380_v36, %v377_v35  ;;  %v383_v40 = vld [vmem:[#allocation7 + $0x120] sm:$0xff]  ;;  %v390_v43 = vld [vmem:[#allocation7 + $0x158] sm:$0xff] }
  0xc0   : > { %v1044_v41 = vpack.c.bf16 %v387_v38, %v384_v37  ;;  %v393_v44 = vld [vmem:[#allocation7 + $0x170] sm:$0xff]  ;;  %v352_v46 = vld [vmem:[#allocation7 + $0x28] sm:$0xff]  ;;  %v355_v47 = vld [vmem:[#allocation7 + $0x40] sm:$0xff]  ;;  %v1046_v50 = vpack.c.bf16 %v386_v42, %v383_v40  ;;  %p1390_p6 = por %p1389_p8, %p1388_p0 }
  0xc1   : > { %v349_v45 = vld [vmem:[#allocation7 + $0x10] sm:$0xff]  ;;  %v358_v49 = vld [vmem:[#allocation7 + $0x58] sm:$0xff]  ;;  %v1048_v51 = vpack.c.bf16 %v393_v44, %v390_v43  ;;  %v392_v53 = vld [vmem:[#allocation7 + $0x168] sm:$0xff] }
  0xc2   : > { %1031 = vmatpush1.bf16.msra.mxu0 %v1030_v21  ;;  %v1053_v48 = vpack.c.bf16 %v352_v46, %v349_v45  ;;  %v389_v52 = vld [vmem:[#allocation7 + $0x150] sm:$0xff]  ;;  %v396_v54 = vld [vmem:[#allocation8 + $0x8] sm:$0xff]  ;;  %v1056_v55 = vpack.c.bf16 %v358_v49, %v355_v47  ;;  %v398_v56 = vld [vmem:[#allocation8 + $0x18] sm:$0xff]  ;;  %p1391_p10 = pnand %p1390_p6, %p1384_p4 }
  0xc3   : > { %1033 = vmatprep.subr.bf16.mxu0 %v1032_v22  ;;  %v361_v57 = vld [vmem:[#allocation7 + $0x70] sm:$0xff]  ;;  %v364_v58 = vld [vmem:[#allocation7 + $0x88] sm:$0xff]  ;;  %v1050_v59 = vpack.c.bf16 %v392_v53, %v389_v52  ;;  %v1076_v60 = vpack.c.bf16 %v398_v56, %v396_v54  ;;  %v395_v61 = vld [vmem:[#allocation8] sm:$0xff] }
  0xc4   : > { %1054 = vmatpush3.bf16.msra.mxu1 %v1053_v48  ;;  %v397_v62 = vld [vmem:[#allocation8 + $0x10] sm:$0xff]  ;;  %v400_v63 = vld [vmem:[#allocation8 + $0x28] sm:$0xff]  ;;  %v1059_v2 = vpack.c.bf16 %v364_v58, %v361_v57  ;;  %v402_v3 = vld [vmem:[#allocation8 + $0x38] sm:$0xff] }
  0xc5   : > { %1055 = vmatprep.subr.bf16.mxu1 %v1473_v1  ;;  %v367_v4 = vld [vmem:[#allocation7 + $0xa0] sm:$0xff]  ;;  %v370_v5 = vld [vmem:[#allocation7 + $0xb8] sm:$0xff]  ;;  %v1078_v7 = vpack.c.bf16 %v397_v62, %v395_v61  ;;  %v1080_v8 = vpack.c.bf16 %v402_v3, %v400_v63  ;;  %v401_v10 = vld [vmem:[#allocation8 + $0x30] sm:$0xff] }
  0xc6   : > { %1035 = vmatpush1.bf16.msra.mxu0 %v1034_v27  ;;  %v1760_v6 = vld [vmem:[%s301_s9] sm:$0xff]  ;;  %v399_v9 = vld [vmem:[#allocation8 + $0x20] sm:$0xff]  ;;  %v404_v11 = vld [vmem:[#allocation8 + $0x48] sm:$0xff]  ;;  %v1062_v12 = vpack.c.bf16 %v370_v5, %v367_v4 }
  0xc7   : > { %1037 = vmatprep.subr.bf16.mxu0 %v1036_v28  ;;  %v406_v13 = vld [vmem:[#allocation8 + $0x58] sm:$0xff]  ;;  %v373_v14 = vld [vmem:[#allocation7 + $0xd0] sm:$0xff]  ;;  %v376_v15 = vld [vmem:[#allocation7 + $0xe8] sm:$0xff]  ;;  %v1082_v16 = vpack.c.bf16 %v401_v10, %v399_v9 }
  0xc8   : > { %1057 = vmatpush3.bf16.msra.mxu1 %v1056_v55  ;;  %v1084_v17 = vpack.c.bf16 %v406_v13, %v404_v11  ;;  %v403_v18 = vld [vmem:[#allocation8 + $0x40] sm:$0xff]  ;;  %v405_v19 = vld [vmem:[#allocation8 + $0x50] sm:$0xff]  ;;  %v408_v20 = vld [vmem:[#allocation8 + $0x68] sm:$0xff]  ;;  %v1065_v21 = vpack.c.bf16 %v376_v15, %v373_v14 }
  0xc9   : > { %1058 = vmatprep.subr.bf16.mxu1 %v1473_v1  ;;  %v410_v22 = vld [vmem:[#allocation8 + $0x78] sm:$0xff]  ;;  %v379_v23 = vld [vmem:[#allocation7 + $0x100] sm:$0xff]  ;;  %v1086_v25 = vpack.c.bf16 %v405_v19, %v403_v18  ;;  %v409_v28 = vld [vmem:[#allocation8 + $0x70] sm:$0xff] }
  0xca   : > { %1039 = vmatpush1.bf16.msra.mxu0 %v1038_v33  ;;  %v382_v24 = vld [vmem:[#allocation7 + $0x118] sm:$0xff]  ;;  %v1088_v26 = vpack.c.bf16 %v410_v22, %v408_v20  ;;  %v407_v27 = vld [vmem:[#allocation8 + $0x60] sm:$0xff]  ;;  %v412_v29 = vld [vmem:[#allocation8 + $0x88] sm:$0xff] }
  0xcb   : > { %1041 = vmatprep.subr.bf16.mxu0 %v1040_v34  ;;  %v1068_v30 = vpack.c.bf16 %v382_v24, %v379_v23  ;;  %v414_v31 = vld [vmem:[#allocation8 + $0x98] sm:$0xff]  ;;  %v385_v32 = vld [vmem:[#allocation7 + $0x130] sm:$0xff]  ;;  %v388_v33 = vld [vmem:[#allocation7 + $0x148] sm:$0xff]  ;;  %v1090_v34 = vpack.c.bf16 %v409_v28, %v407_v27 }
  0xcc   : > { %1060 = vmatpush3.bf16.msra.mxu1 %v1059_v2  ;;  %v1092_v35 = vpack.c.bf16 %v414_v31, %v412_v29  ;;  %v411_v36 = vld [vmem:[#allocation8 + $0x80] sm:$0xff]  ;;  %v413_v37 = vld [vmem:[#allocation8 + $0x90] sm:$0xff]  ;;  %v416_v38 = vld [vmem:[#allocation8 + $0xa8] sm:$0xff] }
  0xcd   : > { %1061 = vmatprep.subr.bf16.mxu1 %v1473_v1  ;;  %v418_v40 = vld [vmem:[#allocation8 + $0xb8] sm:$0xff]  ;;  %v1094_v43 = vpack.c.bf16 %v413_v37, %v411_v36  ;;  %v415_v45 = vld [vmem:[#allocation8 + $0xa0] sm:$0xff]  ;;  %v417_v46 = vld [vmem:[#allocation8 + $0xb0] sm:$0xff] }
  0xce   : > { %1043 = vmatpush1.bf16.msra.mxu0 %v1042_v39  ;;  %v1071_v39 = vpack.c.bf16 %v388_v33, %v385_v32  ;;  %v394_v42 = vld [vmem:[#allocation7 + $0x178] sm:$0xff]  ;;  %v1096_v44 = vpack.c.bf16 %v418_v40, %v416_v38  ;;  %v420_v47 = vld [vmem:[#allocation8 + $0xc8] sm:$0xff]  ;;  %v1098_v52 = vpack.c.bf16 %v417_v46, %v415_v45  ;;  %v419_v54 = vld [vmem:[#allocation8 + $0xc0] sm:$0xff] }
  0xcf   : > { %1045 = vmatprep.subr.bf16.mxu0 %v1044_v41  ;;  %v391_v41 = vld [vmem:[#allocation7 + $0x160] sm:$0xff]  ;;  %v422_v49 = vld [vmem:[#allocation8 + $0xd8] sm:$0xff]  ;;  %v421_v55 = vld [vmem:[#allocation8 + $0xd0] sm:$0xff] }
  0xd0   : > { %1063 = vmatpush3.bf16.msra.mxu1 %v1062_v12  ;;  %v1074_v48 = vpack.c.bf16 %v394_v42, %v391_v41  ;;  %v1100_v53 = vpack.c.bf16 %v422_v49, %v420_v47  ;;  %v424_v57 = vld [vmem:[#allocation8 + $0xe8] sm:$0xff]  ;;  %v426_v58 = vld [vmem:[#allocation8 + $0xf8] sm:$0xff]  ;;  %v423_v61 = vld [vmem:[#allocation8 + $0xe0] sm:$0xff] }
  0xd1   : > { %1064 = vmatprep.subr.bf16.mxu1 %v1473_v1  ;;  %v425_v62 = vld [vmem:[#allocation8 + $0xf0] sm:$0xff]  ;;  %v1776_v2 = vld [vmem:[%s292_s10] sm:$0xff]  ;;  %v430_v4 = vld [vmem:[#allocation10 + $0x18] sm:$0xff] }
  0xd2   : > { %1047 = vmatpush1.bf16.msra.mxu0 %v1046_v50  ;;  %v427_v50 = vld [vmem:[#allocation10] sm:$0xff]  ;;  %v1106_v63 = vpack.c.bf16 %v425_v62, %v423_v61  ;;  %v429_v3 = vld [vmem:[#allocation10 + $0x10] sm:$0xff]  ;;  %v434_v9 = vld [vmem:[#allocation10 + $0x38] sm:$0xff] }
  0xd3   : > { %1049 = vmatprep.subr.bf16.mxu0 %v1048_v51  ;;  %v428_v51 = vld [vmem:[#allocation10 + $0x8] sm:$0xff]  ;;  %v1112_v5 = vpack.c.bf16 %v430_v4, %v429_v3  ;;  %v435_v11 = vld [vmem:[#allocation10 + $0x40] sm:$0xff]  ;;  %v437_v14 = vld [vmem:[#allocation10 + $0x50] sm:$0xff] }
  0xd4   : > { %1066 = vmatpush3.bf16.msra.mxu1 %v1065_v21  ;;  %v1109_v56 = vpack.c.bf16 %v428_v51, %v427_v50  ;;  %v436_v12 = vld [vmem:[#allocation10 + $0x48] sm:$0xff]  ;;  %v438_v15 = vld [vmem:[#allocation10 + $0x58] sm:$0xff]  ;;  %v441_v19 = vld [vmem:[#allocation10 + $0x70] sm:$0xff] }
  0xd5   : > { %1067 = vmatprep.subr.bf16.mxu1 %v1473_v1  ;;  %v1121_v13 = vpack.c.bf16 %v436_v12, %v435_v11  ;;  %v440_v18 = vld [vmem:[#allocation10 + $0x68] sm:$0xff]  ;;  %v442_v21 = vld [vmem:[#allocation10 + $0x78] sm:$0xff] }
  0xd6   : > { %1051 = vmatpush1.bf16.msra.mxu0 %v1050_v59  ;;  %v1102_v59 = vpack.c.bf16 %v421_v55, %v419_v54  ;;  %v1130_v22 = vpack.c.bf16 %v442_v21, %v441_v19 }
  0xd7   : > { %1077 = vmatprep.subr.bf16.mxu0 %v1076_v60  ;;  %v1104_v60 = vpack.c.bf16 %v426_v58, %v424_v57 }
  0xd8   : > { %1069 = vmatpush3.bf16.msra.mxu1 %v1068_v30  ;;  %v910_v30 = vld [vmem:[%s1844_s5] ss:$0 sm:$0xff] }
  0xd9   : > { %511 = vmatmul.mubr.f32.vlgmr.msra.gmra.mrb[0].mxu0 %v1760_v6  ;;  %1070 = vmatprep.subr.bf16.mxu1 %v1473_v1 }
  0xda   : > { %1079 = vmatpush1.bf16.msra.mxu0 %v1078_v7  ;;  %651 = vmatprep.mubr.f32.mxu0 %v1472_v0  ;;  %v432_v7 = vld [vmem:[#allocation10 + $0x28] sm:$0xff] }
  0xdb   : > { %1081 = vmatprep.subr.bf16.mxu0 %v1080_v8 }
  0xdc   : > { %1072 = vmatpush3.bf16.msra.mxu1 %v1071_v39 }
  0xdd   : > { %1073 = vmatprep.subr.bf16.mxu1 %v1473_v1 }
  0xde   : > { %1083 = vmatpush1.bf16.msra.mxu0 %v1082_v16  ;;  %v1124_v16 = vpack.c.bf16 %v438_v15, %v437_v14 }
  0xdf   : > { %1085 = vmatprep.subr.bf16.mxu0 %v1084_v17  ;;  %v439_v17 = vld [vmem:[#allocation10 + $0x60] sm:$0xff] }
  0xe0   : > { %1075 = vmatpush3.bf16.msra.mxu1 %v1074_v48  ;;  %v1127_v20 = vpack.c.bf16 %v440_v18, %v439_v17 }
  0xe1   : > { %1108 = vmatprep.subr.bf16.mxu1 %v1473_v1 }
  0xe2   : > { %1087 = vmatpush1.bf16.msra.mxu0 %v1086_v25 }
  0xe3   : > { %1089 = vmatprep.subr.bf16.mxu0 %v1088_v26  ;;  %983 = vmatmul.mubr.f32.vlgmr.msra.gmra.mrb[0].mxu1 %v1760_v6  ;;  %v431_v6 = vld [vmem:[#allocation10 + $0x20] sm:$0xff] }
  0xe4   : > { %1110 = vmatpush3.bf16.msra.mxu1 %v1109_v56  ;;  %1017 = vmatprep.mubr.msk.f32.mxu1 %vm1474_vm0, %v1472_v0  ;;  %v1115_v8 = vpack.c.bf16 %v432_v7, %v431_v6  ;;  %v433_v0 = vld [vmem:[#allocation10 + $0x30] sm:$0xff] }
  0xe5   : > { %1111 = vmatprep.subr.bf16.mxu1 %v1473_v1  ;;  %v1118_v10 = vpack.c.bf16 %v434_v9, %v433_v0 }
  0xe6   : > { %1091 = vmatpush1.bf16.msra.mxu0 %v1090_v34 }
  0xe7   : > { %1093 = vmatprep.subr.bf16.mxu0 %v1092_v35 }
  0xe8   : > { %1113 = vmatpush3.bf16.msra.mxu1 %v1112_v5 }
  0xe9   : > { %1114 = vmatprep.subr.bf16.mxu1 %v1473_v1 }
  0xea   : > { %1095 = vmatpush1.bf16.msra.mxu0 %v1094_v43 }
  0xeb   : > { %1097 = vmatprep.subr.bf16.mxu0 %v1096_v44 }
  0xec   : > { %1116 = vmatpush3.bf16.msra.mxu1 %v1115_v8 }
  0xed   : > { %1117 = vmatprep.subr.bf16.mxu1 %v1473_v1 }
  0xee   : > { %1099 = vmatpush1.bf16.msra.mxu0 %v1098_v52 }
  0xef   : > { %1101 = vmatprep.subr.bf16.mxu0 %v1100_v53 }
  0xf0   : > { %1119 = vmatpush3.bf16.msra.mxu1 %v1118_v10 }
  0xf1   : > { %1120 = vmatprep.subr.bf16.mxu1 %v1473_v1 }
  0xf2   : > { %1103 = vmatpush1.bf16.msra.mxu0 %v1102_v59 }
  0xf3   : > { %1105 = vmatprep.subr.bf16.mxu0 %v1104_v60 }
  0xf4   : > { %1122 = vmatpush3.bf16.msra.mxu1 %v1121_v13 }
  0xf5   : > { %1123 = vmatprep.subr.bf16.mxu1 %v1473_v1 }
  0xf6   : > { %1107 = vmatpush1.bf16.msra.mxu0 %v1106_v63 }
  0xf8   : > { %1125 = vmatpush3.bf16.msra.mxu1 %v1124_v16 }
  0xf9   : > { %652 = vmatmul.mubr.f32.vlgmr.msra.gmra.mrb[0].mxu0 %v1776_v2  ;;  %1126 = vmatprep.subr.bf16.mxu1 %v1473_v1 }
  0xfc   : > { %1128 = vmatpush3.bf16.msra.mxu1 %v1127_v20 }
  0xfd   : > { %1129 = vmatprep.subr.bf16.mxu1 %v1473_v1 }
 0x100   : > { %1131 = vmatpush3.bf16.msra.mxu1 %v1130_v22 }
 0x1cc   : > { %v653_v23 = vpop.f32.mrb[0].mxu0 }
 0x1cd   : > { %v909_v24 = vmul.f32 -1.442695, %v653_v23  ;;  %v655_v25 = vpop.f32.mrb[1].mxu0 }
 0x1ce   : > { %v672_v31 = vsub.f32 %v655_v25, %v910_v30 }
 0x1cf   : > { %1227 = vpow2.f32 %v909_v24 }
 0x1d0   : > { %v911_v1 = vmul.f32 -1.442695, %v672_v31 }
 0x1d9   : > { %v1228_v26 = vpop.eup %1227 }
 0x1da   : > { %v662_v27 = vadd.f32 1.0, %v1228_v26 }
 0x1dc   : > { %1229 = vrcp.f32 %v662_v27 }
 0x1dd   : > { %1231 = vpow2.f32 %v911_v1 }
 0x1e6   : > { %v1230_v28 = vpop.eup %1229 }
 0x1e7   : > { %v679_v29 = vmul.f32 %v1230_v28, %v1776_v2  ;;  %v1232_v32 = vpop.eup %1231 }
 0x1e8   : > { %v676_v33 = vadd.f32 1.0, %v1232_v32 }
 0x1e9   : > { %1018 = vmatmul.mubr.f32.vlgmr.msra.gmra.mrb[0].mxu1 %v679_v29 }
 0x1ea   : > { %1233 = vrcp.f32 %v676_v33 }
 0x1f4   : > { %v1234_v36 = vpop.eup %1233 }
 0x1f5   : > { %v752_v37 = vsub.f32 1.0, %v1234_v36 }
 0x1f7   : > { %v753_v40 = vmul.f32 %v752_v37, %v1776_v2 }
 0x2bc   : > { %v746_v34 = vpop.f32.mrb[0].mxu1 }
 0x2bd   : > { %1235 = vtanh.f32 %v746_v34  ;;  %v1019_v35 = vpop.f32.mrb[1].mxu1 }
 0x2c7   : > { %v1236_v38 = vpop.eup %1235 }
 0x2c8   : > { %v754_v39 = vmul.f32 %v1236_v38, %v1234_v36 }
 0x2ca   : > { %v755_v41 = vadd.f32 %v754_v39, %v753_v40 }
 0x2cc   : > { %756 = vst [vmem:[%s346_s8] sm:$0xff] %v755_v41 }
 0x2cd   : > { %1394 = shalt.err (!%p1391_p10)
}
 0x2ce   : > { %s1395_s2 = scalar_lea.hbm %s1795_s11, 128  ;;  %s1399_s29 = scalar_lea.hbm %s1845_s6, 256 }
 0x2cf   : > { %p1396_p13 = scmp.ne.s32.totalorder %s1795_s11, %s1395_s2  ;;  %p1400_p9 = scmp.lt.u32.totalorder %s1795_s11, %s1845_s6 }
 0x2d0   : > { %p1401_p3 = scmp.lt.u32.totalorder %s1399_s29, %s1395_s2  ;;  %p1403_p12 = scmp.lt.u32.totalorder %s1395_s2, %s1795_s11 }
 0x2d1   : > { %p1397_p5 = pnand %p1396_p13, %p1870_p2 }
 0x2d2   : > { %p1402_p7 = por %p1401_p3, %p1400_p9 }
 0x2d3   : > { %p1398_p11 = pneg %p1397_p5 }
 0x2d4   : > { %p1404_p1 = por %p1403_p12, %p1402_p7 }
 0x2d6   : > { %p1405_p4 = pnand %p1404_p1, %p1398_p11 }
 0x2d8   : > { %1408 = shalt.err (!%p1405_p4)
}
 0x2d9   : > { %1152 = dma.vmem_to_hbm [thread:$0]  (%p1870_p2), %s1797_s15, 128, %s1795_s11, %s758_s7  }
 0x2da PF: > { %s783_s27 = sand.u32 1, %s1447_s21   ;;  %p1871_p0 = scmp.ne.s32.totalorder %s1854_s28, 0 }
 0x2db   : > { %p1872_p8 = scmp.ge.s32.totalorder %s1459_s24, 2  ;;  %s784_s26 = scalar_lea.sflag [#allocation4], %s783_s27 }
 0x2dd   : > { %p1172_p6 = pnand %p1872_p8, %p1871_p0 }
 0x2df   : > { %1442 = dma.done.wait (!%p1172_p6), %s784_s26, 128  }
 0x2e0   : > { %1444 = vsyncadd (!%p1172_p6), %s784_s26, 4294967168  ;;  %p23_p10 = scmp.ge.s32.totalorder %s1639_s30, 4   ;;  %s1873_s21 = smov %s1451_s22 }
 0x2e1   : > { %s1874_s22 = smov %s1455_s23  ;;  %s1875_s23 = smov %s1649_s13 }
 0x2e2   : > { %s1876_s24 = smov %s1639_s30  ;;  %25 = sbr.rel (!%p23_p10) target bundleno = 12 (0xc), region = 114 }
 0x2e9   :  { %789 = vsyncpa [#allocation3], 1 }
 0x2ea   :  { %791 = vsyncpa [#allocation3 + $0x1], 1 }
 0x2eb   :  { %792 = vsyncpa [#allocation6], 1 }
 0x2ec   :  { %794 = vsyncpa [#allocation6 + $0x1], 1 }
 0x2ed   :  { %795 = vsyncpa [#allocation9], 1 }
 0x2ee   :  { %796 = vsyncpa [#allocation4], 1 }
 0x2ef   :  { %798 = vsyncpa [#allocation4 + $0x1], 1 }

</bundles_post_ra>
